<compile_context>
chip_gen: v7x
topology: tpu7x:2x2x1
jax: 0.10.0
libtpu: 0.0.40
codegen_flags: <defaults>
</compile_context>

<pallas_src>
import math
from functools import partial

import jax
import jax.numpy as jnp
from jax.experimental import pallas as pl
from jax.experimental.pallas import tpu as pltpu


def _flash_attention_kernel(q_ref, k_ref, v_ref, o_ref, m_sc, l_sc, acc_sc,
                            *, causal, seq_len, tq, tk, nk):
    """Blocks: q (1,tq,Hp), k (1,tk,Hp), v (1,tk,Hp), out (1,tq,Hp).
    q is pre-scaled by 1/sqrt(head_dim); inputs are bf16, accumulation f32.
    Scratch m (tq,1), l (tq,1), acc (tq,Hp) persist across the KV grid axis."""
    qi = pl.program_id(1)
    ki = pl.program_id(2)
    needs_kpad = (seq_len % tk) != 0        # padded keys exist (last KV block)

    @pl.when(ki == 0)
    def _init():
        m_sc[...] = jnp.full_like(m_sc, -jnp.inf)
        l_sc[...] = jnp.zeros_like(l_sc)
        acc_sc[...] = jnp.zeros_like(acc_sc)

    def _compute(apply_causal, apply_kpad):
        q = q_ref[0]                                           # (tq, Hp) bf16
        k = k_ref[0]                                           # (tk, Hp) bf16
        v = v_ref[0]                                           # (tk, Hp) bf16

        # scores = q @ k^T (contract last dims, no k relayout), f32 accum.
        s = jax.lax.dot_general(q, k, (((1,), (1,)), ((), ())),
                                preferred_element_type=jnp.float32)  # (tq, tk)

        if apply_causal or apply_kpad:
            col = ki * tk + jax.lax.broadcasted_iota(jnp.int32, (tq, tk), 1)
            valid = None
            if apply_causal:
                row = qi * tq + jax.lax.broadcasted_iota(jnp.int32, (tq, tk), 0)
                valid = col <= row
            if apply_kpad:
                pad_ok = col < seq_len
                valid = pad_ok if valid is None else (valid & pad_ok)
            s = jnp.where(valid, s, -jnp.inf)

        m_prev = m_sc[...]
        m_new = jnp.maximum(m_prev, jnp.max(s, axis=-1, keepdims=True))
        alpha = jnp.exp(m_prev - m_new)
        p = jnp.exp(s - m_new)
        l_sc[...] = alpha * l_sc[...] + jnp.sum(p, axis=-1, keepdims=True)
        acc_sc[...] = alpha * acc_sc[...] + jnp.dot(
            p.astype(v.dtype), v, preferred_element_type=jnp.float32)
        m_sc[...] = m_new

    if causal:
        # Diagonal block: causal mask (plus key-padding mask if S was padded).
        pl.when(ki == qi)(lambda: _compute(True, needs_kpad))
        # Strictly-lower blocks contain no padded keys and need no mask at all.
        pl.when(ki < qi)(lambda: _compute(False, False))
        # ki > qi: skipped entirely (and never DMA'd — index_map clamps ki).
    else:
        if needs_kpad:
            pl.when(ki == nk - 1)(lambda: _compute(False, True))
            pl.when(ki < nk - 1)(lambda: _compute(False, False))
        else:
            _compute(False, False)

    @pl.when(ki == nk - 1)
    def _finalize():
        l = l_sc[...]
        # EUP approximate reciprocal + one Newton step ≈ f32 accuracy while
        # keeping the divide off the VALU slot.
        r = pl.reciprocal(l, approx=True)
        r = r * (2.0 - l * r)
        o_ref[0] = (acc_sc[...] * r).astype(o_ref.dtype)


def attention_head_forward(x, params, *, head_dim, mask=False, block_q=128,
                           compute_dtype=jnp.bfloat16):
    """x: (B, S, D) float32. params: wq,bq,wk,bk,wv,bv with weights (D, H).
    Returns (B, S, H) float32 matching AttentionHead.forward."""
    assert block_q % 128 == 0, "score tile must be lane-dense (multiple of 128)"
    B, S, D = x.shape
    H = head_dim
    tq = tk = block_q                       # tq == tk keeps causal skip valid

    # Pad head dim to a lane-dense multiple of 128 and the sequence to a
    # multiple of the tile. Zero padding of weights/biases/x keeps the math
    # exact: padded head dims contribute 0 to q·k and to the output (sliced),
    # padded key positions are masked to -inf in-kernel.
    Hp = max(128, ((H + 127) // 128) * 128)
    Sp = ((S + tq - 1) // tq) * tq
    nq = nk = Sp // tq

    def padw(w):
        return jnp.pad(w, ((0, 0), (0, Hp - H)))

    def padb(b):
        return jnp.pad(b, ((0, 0), (0, Hp - H)))

    # Fused Q|K|V projection hoisted out of the flash kernel: one
    # (B·Sp, D) @ (D, 3Hp) GEMM, bf16 operands, f32 accumulation.
    W = jnp.concatenate([padw(params["wq"]), padw(params["wk"]),
                         padw(params["wv"])], axis=1)             # (D, 3Hp)
    bias = jnp.concatenate([padb(params["bq"]), padb(params["bk"]),
                            padb(params["bv"])], axis=1)          # (1, 3Hp)

    xp = x if Sp == S else jnp.pad(x, ((0, 0), (0, Sp - S), (0, 0)))
    qkv = jax.lax.dot_general(
        xp.astype(compute_dtype), W.astype(compute_dtype),
        (((2,), (0,)), ((), ())),
        preferred_element_type=jnp.float32) + bias                # (B, Sp, 3Hp)

    # Pre-scale Q by 1/sqrt(head_dim): the reference scales after adding the
    # -inf mask, and -inf stays -inf under scaling, so this is equivalent.
    scale = 1.0 / math.sqrt(H)
    q = (qkv[..., :Hp] * scale).astype(compute_dtype)
    k = qkv[..., Hp:2 * Hp].astype(compute_dtype)
    v = qkv[..., 2 * Hp:].astype(compute_dtype)

    # In causal mode clamp the K/V block index so fully-future blocks are
    # never fetched (Pallas only issues a DMA when the block index changes).
    if mask:
        kv_map = lambda b, qi, ki: (b, jnp.minimum(ki, qi), 0)
    else:
        kv_map = lambda b, qi, ki: (b, ki, 0)

    kernel = partial(_flash_attention_kernel, causal=mask, seq_len=S,
                     tq=tq, tk=tk, nk=nk)

    # TODO(synk): for v5e, pipeline_mode=pl.Buffered(3) on the K/V specs could
    # further hide the streamed-KV DMA latency.
    out = pl.pallas_call(
        kernel,
        out_shape=jax.ShapeDtypeStruct((B, Sp, Hp), jnp.float32),
        grid_spec=pltpu.PrefetchScalarGridSpec(
            num_scalar_prefetch=0,
            grid=(B, nq, nk),
            in_specs=[
                pl.BlockSpec((1, tq, Hp), lambda b, qi, ki: (b, qi, 0)),   # q
                pl.BlockSpec((1, tk, Hp), kv_map),                         # k
                pl.BlockSpec((1, tk, Hp), kv_map),                         # v
            ],
            out_specs=pl.BlockSpec((1, tq, Hp), lambda b, qi, ki: (b, qi, 0)),
            scratch_shapes=[
                pltpu.VMEM((tq, 1), jnp.float32),    # running max m
                pltpu.VMEM((tq, 1), jnp.float32),    # running denom l
                pltpu.VMEM((tq, Hp), jnp.float32),   # output accumulator
            ]),
        compiler_params=pltpu.CompilerParams(
            dimension_semantics=("parallel", "parallel", "arbitrary"),
            vmem_limit_bytes=32 * 1024 * 1024),
    )(q, k, v)

    return out[:, :S, :H]


def init_params(key, input_dim, head_dim):
    """Deterministic nn.Linear-style init. Weights stored as (D, H)."""
    ks = jax.random.split(key, 6)
    bound = 1.0 / math.sqrt(input_dim)

    def w(k):
        return jax.random.uniform(k, (input_dim, head_dim),
                                  jnp.float32, -bound, bound)

    def b(k):
        return jax.random.uniform(k, (1, head_dim), jnp.float32, -bound, bound)

    return {"wq": w(ks[0]), "bq": b(ks[1]),
            "wk": w(ks[2]), "bk": b(ks[3]),
            "wv": w(ks[4]), "bv": b(ks[5])}


def _reference(x, params, head_dim, mask=False):
    q = x @ params["wq"] + params["bq"]
    k = x @ params["wk"] + params["bk"]
    v = x @ params["wv"] + params["bv"]
    scores = jnp.einsum("bsd,btd->bst", q, k)
    if mask:
        s = scores.shape[-1]
        m = jnp.where(jnp.tril(jnp.ones((s, s))) == 1, 0.0, -jnp.inf)
        scores = scores + m
    scores = scores / math.sqrt(head_dim)
    attn = jax.nn.softmax(scores, axis=-1)
    return jnp.einsum("bst,btd->bsd", attn, v)


if __name__ == "__main__":
    # bf16 MXU operands (f32 accumulation) -> relaxed tolerances vs f32 ref.
    ATOL = RTOL = 2e-2

    # Small shape consistent with the module (batch=2, seq=8, D=32, H=16).
    B, S, INPUT_DIM, HEAD_DIM = 2, 8, 32, 16
    key = jax.random.PRNGKey(0)
    kx, kp = jax.random.split(key)
    x = jax.random.normal(kx, (B, S, INPUT_DIM), jnp.float32)
    params = init_params(kp, INPUT_DIM, HEAD_DIM)

    # Module default: mask=False.
    out = attention_head_forward(x, params, head_dim=HEAD_DIM, mask=False)
    out = jax.block_until_ready(out)
    ref = _reference(x, params, HEAD_DIM, mask=False)
    assert out.shape == (B, S, HEAD_DIM)
    assert jnp.allclose(out, ref, atol=ATOL, rtol=RTOL), "mismatch (mask=False)"

    # Causal path.
    out_m = attention_head_forward(x, params, head_dim=HEAD_DIM, mask=True)
    out_m = jax.block_until_ready(out_m)
    ref_m = _reference(x, params, HEAD_DIM, mask=True)
    assert jnp.allclose(out_m, ref_m, atol=ATOL, rtol=RTOL), "mismatch (mask=True)"

    # Multi-block flash path (2 query blocks x 2 KV blocks), causal.
    B2, S2, D2, H2 = 2, 256, 128, 64
    k2x, k2p = jax.random.split(jax.random.PRNGKey(1))
    x2 = jax.random.normal(k2x, (B2, S2, D2), jnp.float32)
    p2 = init_params(k2p, D2, H2)
    out2 = attention_head_forward(x2, p2, head_dim=H2, mask=True, block_q=128)
    out2 = jax.block_until_ready(out2)
    ref2 = _reference(x2, p2, H2, mask=True)
    assert jnp.allclose(out2, ref2, atol=ATOL, rtol=RTOL), "mismatch (tiled causal)"

    # Ragged sequence (exercises key-padding mask + padded-row slicing).
    B3, S3, D3, H3 = 2, 200, 128, 64
    k3x, k3p = jax.random.split(jax.random.PRNGKey(2))
    x3 = jax.random.normal(k3x, (B3, S3, D3), jnp.float32)
    p3 = init_params(k3p, D3, H3)
    out3 = attention_head_forward(x3, p3, head_dim=H3, mask=False)
    out3 = jax.block_until_ready(out3)
    ref3 = _reference(x3, p3, H3, mask=False)
    assert jnp.allclose(out3, ref3, atol=ATOL, rtol=RTOL), "mismatch (ragged)"
    out3m = attention_head_forward(x3, p3, head_dim=H3, mask=True)
    out3m = jax.block_until_ready(out3m)
    ref3m = _reference(x3, p3, H3, mask=True)
    assert jnp.allclose(out3m, ref3m, atol=ATOL, rtol=RTOL), "mismatch (ragged causal)"

    print("KERNEL_OK")
</pallas_src>

<mosaic_0001>
module attributes {stable_mosaic.version = 11 : i64} {
  func.func @_flash_attention_kernel(%arg0: i32, %arg1: i32, %arg2: i32, %arg3: memref<1x128x128xbf16, #tpu.memory_space<vmem>>, %arg4: memref<1x128x128xbf16, #tpu.memory_space<vmem>>, %arg5: memref<1x128x128xbf16, #tpu.memory_space<vmem>>, %arg6: memref<1x128x128xf32, #tpu.memory_space<vmem>>, %arg7: memref<128x1xf32, #tpu.memory_space<vmem>>, %arg8: memref<128x1xf32, #tpu.memory_space<vmem>>, %arg9: memref<128x128xf32, #tpu.memory_space<vmem>>) attributes {dimension_semantics = [#tpu.dimension_semantics<parallel>, #tpu.dimension_semantics<parallel>, #tpu.dimension_semantics<arbitrary>], iteration_bounds = array<i64: 2, 1, 1>, scalar_prefetch = 0 : i64, scratch_operands = 3 : i64, tpu.core_type = #tpu.core_type<tc>, window_params = [{transform_indices = @transform_0, window_bounds = array<i64: 1, 128, 128>}, {transform_indices = @transform_1, window_bounds = array<i64: 1, 128, 128>}, {transform_indices = @transform_2, window_bounds = array<i64: 1, 128, 128>}, {transform_indices = @transform_3, window_bounds = array<i64: 1, 128, 128>}]} {
    %c0_i32 = arith.constant 0 : i32
    %0 = arith.cmpi eq, %arg2, %c0_i32 : i32
    %1 = arith.extui %0 : i1 to i32
    %c0_i32_0 = arith.constant 0 : i32
    %2 = arith.cmpi ne, %1, %c0_i32_0 : i32
    scf.if %2 {
      %cst = arith.constant 0xFF800000 : f32
      %12 = vector.broadcast %cst : f32 to vector<128x1xf32>
      %c0 = arith.constant 0 : index
      %c0_7 = arith.constant 0 : index
      %13 = vector.load %arg7[%c0, %c0_7] : memref<128x1xf32, #tpu.memory_space<vmem>>, vector<128x1xf32>
      tpu.vector_store %arg7[%c0, %c0_7], %12 {strides = array<i32>} : memref<128x1xf32, #tpu.memory_space<vmem>>, vector<128x1xf32>,
      %cst_8 = arith.constant 0.000000e+00 : f32
      %14 = vector.broadcast %cst_8 : f32 to vector<128x1xf32>
      %c0_9 = arith.constant 0 : index
      %c0_10 = arith.constant 0 : index
      %15 = vector.load %arg8[%c0_9, %c0_10] : memref<128x1xf32, #tpu.memory_space<vmem>>, vector<128x1xf32>
      tpu.vector_store %arg8[%c0_9, %c0_10], %14 {strides = array<i32>} : memref<128x1xf32, #tpu.memory_space<vmem>>, vector<128x1xf32>,
      %cst_11 = arith.constant 0.000000e+00 : f32
      %16 = vector.broadcast %cst_11 : f32 to vector<128x128xf32>
      %c0_12 = arith.constant 0 : index
      %c0_13 = arith.constant 0 : index
      %17 = vector.load %arg9[%c0_12, %c0_13] : memref<128x128xf32, #tpu.memory_space<vmem>>, vector<128x128xf32>
      tpu.vector_store %arg9[%c0_12, %c0_13], %16 {strides = array<i32>} : memref<128x128xf32, #tpu.memory_space<vmem>>, vector<128x128xf32>,
    } else {
    }
    %c0_i32_1 = arith.constant 0 : i32
    %3 = arith.cmpi eq, %arg2, %c0_i32_1 : i32
    %4 = arith.extui %3 : i1 to i32
    %c0_i32_2 = arith.constant 0 : i32
    %5 = arith.cmpi ne, %4, %c0_i32_2 : i32
    scf.if %5 {
      %c0 = arith.constant 0 : index
      %c0_7 = arith.constant 0 : index
      %c0_8 = arith.constant 0 : index
      %12 = vector.load %arg3[%c0, %c0_7, %c0_8] : memref<1x128x128xbf16, #tpu.memory_space<vmem>>, vector<1x128x128xbf16>
      %13 = vector.shape_cast %12 : vector<1x128x128xbf16> to vector<128x128xbf16>
      %c0_9 = arith.constant 0 : index
      %c0_10 = arith.constant 0 : index
      %c0_11 = arith.constant 0 : index
      %14 = vector.load %arg4[%c0_9, %c0_10, %c0_11] : memref<1x128x128xbf16, #tpu.memory_space<vmem>>, vector<1x128x128xbf16>
      %15 = vector.shape_cast %14 : vector<1x128x128xbf16> to vector<128x128xbf16>
      %c0_12 = arith.constant 0 : index
      %c0_13 = arith.constant 0 : index
      %c0_14 = arith.constant 0 : index
      %16 = vector.load %arg5[%c0_12, %c0_13, %c0_14] : memref<1x128x128xbf16, #tpu.memory_space<vmem>>, vector<1x128x128xbf16>
      %17 = vector.shape_cast %16 : vector<1x128x128xbf16> to vector<128x128xbf16>
      %cst = arith.constant dense<0.000000e+00> : vector<128x128xf32>
      %18 = tpu.matmul %13, %15, %cst {dimension_numbers = #tpu.dot_dimension_numbers<[1], [1], [0], [0], [0, 0, 1, 0], [], []>} : vector<128x128xbf16>, vector<128x128xbf16>, vector<128x128xf32> -> vector<128x128xf32>
      %c128_i32 = arith.constant 128 : i32
      %19 = arith.muli %arg2, %c128_i32 : i32
      %20 = tpu.iota {dimensions = array<i32: 1>} : vector<128x128xi32>
      %21 = vector.broadcast %19 : i32 to vector<128x128xi32>
      %22 = arith.addi %21, %20 : vector<128x128xi32>
      %c8_i32 = arith.constant 8 : i32
      %23 = vector.broadcast %c8_i32 : i32 to vector<128x128xi32>
      %24 = arith.cmpi slt, %22, %23 : vector<128x128xi32>
      %cst_15 = arith.constant 0xFF800000 : f32
      %25 = vector.broadcast %cst_15 : f32 to vector<128x128xf32>
      %26 = arith.select %24, %18, %25 : vector<128x128xi1>, vector<128x128xf32>
      %c0_16 = arith.constant 0 : index
      %c0_17 = arith.constant 0 : index
      %27 = vector.load %arg7[%c0_16, %c0_17] : memref<128x1xf32, #tpu.memory_space<vmem>>, vector<128x1xf32>
      %cst_18 = arith.constant dense<0xFF800000> : vector<128xf32>
      %28 = vector.multi_reduction <maximumf>, %26, %cst_18 [1] : vector<128x128xf32> to vector<128xf32>
      %29 = vector.shape_cast %28 : vector<128xf32> to vector<128x1xf32>
      %30 = arith.maximumf %27, %29 : vector<128x1xf32>
      %31 = arith.subf %27, %30 : vector<128x1xf32>
      %32 = math.exp %31 : vector<128x1xf32>
      %33 = vector.broadcast %30 : vector<128x1xf32> to vector<128x128xf32>
      %34 = arith.subf %26, %33 : vector<128x128xf32>
      %35 = math.exp %34 : vector<128x128xf32>
      %c0_19 = arith.constant 0 : index
      %c0_20 = arith.constant 0 : index
      %36 = vector.load %arg8[%c0_19, %c0_20] : memref<128x1xf32, #tpu.memory_space<vmem>>, vector<128x1xf32>
      %37 = arith.mulf %32, %36 : vector<128x1xf32>
      %cst_21 = arith.constant dense<0.000000e+00> : vector<128xf32>
      %38 = vector.multi_reduction <add>, %35, %cst_21 [1] : vector<128x128xf32> to vector<128xf32>
      %39 = vector.shape_cast %38 : vector<128xf32> to vector<128x1xf32>
      %40 = arith.addf %37, %39 : vector<128x1xf32>
      %c0_22 = arith.constant 0 : index
      %c0_23 = arith.constant 0 : index
      %41 = vector.load %arg8[%c0_22, %c0_23] : memref<128x1xf32, #tpu.memory_space<vmem>>, vector<128x1xf32>
      tpu.vector_store %arg8[%c0_22, %c0_23], %40 {strides = array<i32>} : memref<128x1xf32, #tpu.memory_space<vmem>>, vector<128x1xf32>,
      %c0_24 = arith.constant 0 : index
      %c0_25 = arith.constant 0 : index
      %42 = vector.load %arg9[%c0_24, %c0_25] : memref<128x128xf32, #tpu.memory_space<vmem>>, vector<128x128xf32>
      %43 = vector.broadcast %32 : vector<128x1xf32> to vector<128x128xf32>
      %44 = arith.mulf %43, %42 : vector<128x128xf32>
      %45 = arith.truncf %35 : vector<128x128xf32> to vector<128x128xbf16>
      %cst_26 = arith.constant dense<0.000000e+00> : vector<128x128xf32>
      %46 = tpu.matmul %45, %17, %cst_26 {dimension_numbers = #tpu.dot_dimension_numbers<[1], [0], [0], [1], [0, 0, 1, 1], [], []>} : vector<128x128xbf16>, vector<128x128xbf16>, vector<128x128xf32> -> vector<128x128xf32>
      %47 = arith.addf %44, %46 : vector<128x128xf32>
      %c0_27 = arith.constant 0 : index
      %c0_28 = arith.constant 0 : index
      %48 = vector.load %arg9[%c0_27, %c0_28] : memref<128x128xf32, #tpu.memory_space<vmem>>, vector<128x128xf32>
      tpu.vector_store %arg9[%c0_27, %c0_28], %47 {strides = array<i32>} : memref<128x128xf32, #tpu.memory_space<vmem>>, vector<128x128xf32>,
      %c0_29 = arith.constant 0 : index
      %c0_30 = arith.constant 0 : index
      %49 = vector.load %arg7[%c0_29, %c0_30] : memref<128x1xf32, #tpu.memory_space<vmem>>, vector<128x1xf32>
      tpu.vector_store %arg7[%c0_29, %c0_30], %30 {strides = array<i32>} : memref<128x1xf32, #tpu.memory_space<vmem>>, vector<128x1xf32>,
    } else {
    }
    %c0_i32_3 = arith.constant 0 : i32
    %6 = arith.cmpi slt, %arg2, %c0_i32_3 : i32
    %7 = arith.extui %6 : i1 to i32
    %c0_i32_4 = arith.constant 0 : i32
    %8 = arith.cmpi ne, %7, %c0_i32_4 : i32
    scf.if %8 {
      %c0 = arith.constant 0 : index
      %c0_7 = arith.constant 0 : index
      %c0_8 = arith.constant 0 : index
      %12 = vector.load %arg3[%c0, %c0_7, %c0_8] : memref<1x128x128xbf16, #tpu.memory_space<vmem>>, vector<1x128x128xbf16>
      %13 = vector.shape_cast %12 : vector<1x128x128xbf16> to vector<128x128xbf16>
      %c0_9 = arith.constant 0 : index
      %c0_10 = arith.constant 0 : index
      %c0_11 = arith.constant 0 : index
      %14 = vector.load %arg4[%c0_9, %c0_10, %c0_11] : memref<1x128x128xbf16, #tpu.memory_space<vmem>>, vector<1x128x128xbf16>
      %15 = vector.shape_cast %14 : vector<1x128x128xbf16> to vector<128x128xbf16>
      %c0_12 = arith.constant 0 : index
      %c0_13 = arith.constant 0 : index
      %c0_14 = arith.constant 0 : index
      %16 = vector.load %arg5[%c0_12, %c0_13, %c0_14] : memref<1x128x128xbf16, #tpu.memory_space<vmem>>, vector<1x128x128xbf16>
      %17 = vector.shape_cast %16 : vector<1x128x128xbf16> to vector<128x128xbf16>
      %cst = arith.constant dense<0.000000e+00> : vector<128x128xf32>
      %18 = tpu.matmul %13, %15, %cst {dimension_numbers = #tpu.dot_dimension_numbers<[1], [1], [0], [0], [0, 0, 1, 0], [], []>} : vector<128x128xbf16>, vector<128x128xbf16>, vector<128x128xf32> -> vector<128x128xf32>
      %c0_15 = arith.constant 0 : index
      %c0_16 = arith.constant 0 : index
      %19 = vector.load %arg7[%c0_15, %c0_16] : memref<128x1xf32, #tpu.memory_space<vmem>>, vector<128x1xf32>
      %cst_17 = arith.constant dense<0xFF800000> : vector<128xf32>
      %20 = vector.multi_reduction <maximumf>, %18, %cst_17 [1] : vector<128x128xf32> to vector<128xf32>
      %21 = vector.shape_cast %20 : vector<128xf32> to vector<128x1xf32>
      %22 = arith.maximumf %19, %21 : vector<128x1xf32>
      %23 = arith.subf %19, %22 : vector<128x1xf32>
      %24 = math.exp %23 : vector<128x1xf32>
      %25 = vector.broadcast %22 : vector<128x1xf32> to vector<128x128xf32>
      %26 = arith.subf %18, %25 : vector<128x128xf32>
      %27 = math.exp %26 : vector<128x128xf32>
      %c0_18 = arith.constant 0 : index
      %c0_19 = arith.constant 0 : index
      %28 = vector.load %arg8[%c0_18, %c0_19] : memref<128x1xf32, #tpu.memory_space<vmem>>, vector<128x1xf32>
      %29 = arith.mulf %24, %28 : vector<128x1xf32>
      %cst_20 = arith.constant dense<0.000000e+00> : vector<128xf32>
      %30 = vector.multi_reduction <add>, %27, %cst_20 [1] : vector<128x128xf32> to vector<128xf32>
      %31 = vector.shape_cast %30 : vector<128xf32> to vector<128x1xf32>
      %32 = arith.addf %29, %31 : vector<128x1xf32>
      %c0_21 = arith.constant 0 : index
      %c0_22 = arith.constant 0 : index
      %33 = vector.load %arg8[%c0_21, %c0_22] : memref<128x1xf32, #tpu.memory_space<vmem>>, vector<128x1xf32>
      tpu.vector_store %arg8[%c0_21, %c0_22], %32 {strides = array<i32>} : memref<128x1xf32, #tpu.memory_space<vmem>>, vector<128x1xf32>,
      %c0_23 = arith.constant 0 : index
      %c0_24 = arith.constant 0 : index
      %34 = vector.load %arg9[%c0_23, %c0_24] : memref<128x128xf32, #tpu.memory_space<vmem>>, vector<128x128xf32>
      %35 = vector.broadcast %24 : vector<128x1xf32> to vector<128x128xf32>
      %36 = arith.mulf %35, %34 : vector<128x128xf32>
      %37 = arith.truncf %27 : vector<128x128xf32> to vector<128x128xbf16>
      %cst_25 = arith.constant dense<0.000000e+00> : vector<128x128xf32>
      %38 = tpu.matmul %37, %17, %cst_25 {dimension_numbers = #tpu.dot_dimension_numbers<[1], [0], [0], [1], [0, 0, 1, 1], [], []>} : vector<128x128xbf16>, vector<128x128xbf16>, vector<128x128xf32> -> vector<128x128xf32>
      %39 = arith.addf %36, %38 : vector<128x128xf32>
      %c0_26 = arith.constant 0 : index
      %c0_27 = arith.constant 0 : index
      %40 = vector.load %arg9[%c0_26, %c0_27] : memref<128x128xf32, #tpu.memory_space<vmem>>, vector<128x128xf32>
      tpu.vector_store %arg9[%c0_26, %c0_27], %39 {strides = array<i32>} : memref<128x128xf32, #tpu.memory_space<vmem>>, vector<128x128xf32>,
      %c0_28 = arith.constant 0 : index
      %c0_29 = arith.constant 0 : index
      %41 = vector.load %arg7[%c0_28, %c0_29] : memref<128x1xf32, #tpu.memory_space<vmem>>, vector<128x1xf32>
      tpu.vector_store %arg7[%c0_28, %c0_29], %22 {strides = array<i32>} : memref<128x1xf32, #tpu.memory_space<vmem>>, vector<128x1xf32>,
    } else {
    }
    %c0_i32_5 = arith.constant 0 : i32
    %9 = arith.cmpi eq, %arg2, %c0_i32_5 : i32
    %10 = arith.extui %9 : i1 to i32
    %c0_i32_6 = arith.constant 0 : i32
    %11 = arith.cmpi ne, %10, %c0_i32_6 : i32
    scf.if %11 {
      %c0 = arith.constant 0 : index
      %c0_7 = arith.constant 0 : index
      %12 = vector.load %arg8[%c0, %c0_7] : memref<128x1xf32, #tpu.memory_space<vmem>>, vector<128x1xf32>
      %13 = tpu.reciprocal %12 {approx = true} : vector<128x1xf32> -> vector<128x1xf32>
      %14 = arith.mulf %12, %13 : vector<128x1xf32>
      %cst = arith.constant 2.000000e+00 : f32
      %15 = vector.broadcast %cst : f32 to vector<128x1xf32>
      %16 = arith.subf %15, %14 : vector<128x1xf32>
      %17 = arith.mulf %13, %16 : vector<128x1xf32>
      %c0_8 = arith.constant 0 : index
      %c0_9 = arith.constant 0 : index
      %18 = vector.load %arg9[%c0_8, %c0_9] : memref<128x128xf32, #tpu.memory_space<vmem>>, vector<128x128xf32>
      %19 = vector.broadcast %17 : vector<128x1xf32> to vector<128x128xf32>
      %20 = arith.mulf %18, %19 : vector<128x128xf32>
      %c0_10 = arith.constant 0 : index
      %c0_11 = arith.constant 0 : index
      %c0_12 = arith.constant 0 : index
      %21 = vector.load %arg6[%c0_10, %c0_11, %c0_12] : memref<1x128x128xf32, #tpu.memory_space<vmem>>, vector<1x128x128xf32>
      %22 = vector.shape_cast %21 : vector<1x128x128xf32> to vector<128x128xf32>
      %23 = vector.shape_cast %20 : vector<128x128xf32> to vector<1x128x128xf32>
      tpu.vector_store %arg6[%c0_10, %c0_11, %c0_12], %23 {strides = array<i32>} : memref<1x128x128xf32, #tpu.memory_space<vmem>>, vector<1x128x128xf32>,
    } else {
    }
    return
  }
  func.func @transform_0(%arg0: i32, %arg1: i32, %arg2: i32) -> (i32, i32, i32) {
    %c0_i32 = arith.constant 0 : i32
    %c0_i32_0 = arith.constant 0 : i32
    return %arg0, %arg1, %c0_i32 : i32, i32, i32
  }
  func.func @transform_1(%arg0: i32, %arg1: i32, %arg2: i32) -> (i32, i32, i32) {
    %c0_i32 = arith.constant 0 : i32
    %c0_i32_0 = arith.constant 0 : i32
    return %arg0, %arg2, %c0_i32 : i32, i32, i32
  }
  func.func @transform_2(%arg0: i32, %arg1: i32, %arg2: i32) -> (i32, i32, i32) {
    %c0_i32 = arith.constant 0 : i32
    %c0_i32_0 = arith.constant 0 : i32
    return %arg0, %arg2, %c0_i32 : i32, i32, i32
  }
  func.func @transform_3(%arg0: i32, %arg1: i32, %arg2: i32) -> (i32, i32, i32) {
    %c0_i32 = arith.constant 0 : i32
    %c0_i32_0 = arith.constant 0 : i32
    return %arg0, %arg1, %c0_i32 : i32, i32, i32
  }
}

</mosaic_0001>

<bundles_post_ra>
// kernel: tpu_custom_call.1
= control target key start
LH: loop header
LB: loop body
LE: loop exit
PB: predicated region body
PF: predicated region fallthrough
CT: control target
= control target key end

     0   :  { %s3867_s0 = inlined_call_operand.hbm [shape: bf16[2,128,128], index: 0, kind: input, shape index: {}]   ;;  %s3868_s1 = inlined_call_operand.hbm [shape: bf16[2,128,128], index: 1, kind: input, shape index: {}]   ;;  %s3869_s2 = inlined_call_operand.hbm [shape: bf16[2,128,128], index: 2, kind: input, shape index: {}]   ;;  %s3870_s3 = inlined_call_operand.hbm [shape: f32[2,128,128], index: 3, kind: output, shape index: {}]  }
   0x1   :  { %3880 = sst [smem:[#allocation18_spill]] %s3868_s1 }
   0x2   :  { %8 = vsyncpa [#allocation6], 0 }
   0x3   :  { %10 = vsyncpa [#allocation6 + $0x1], 0 }
   0x4   :  { %11 = vsyncpa [#allocation9], 0 }
   0x5   :  { %13 = vsyncpa [#allocation9 + $0x1], 0 }
   0x6   :  { %14 = vsyncpa [#allocation7], 0 }
   0x7   :  { %16 = vsyncpa [#allocation7 + $0x1], 0  ;;  %s3111_s12 = smov 0   ;;  %s3113_s13 = smov 0  }
   0x8   :  { %s3115_s14 = smov 0   ;;  %s3117_s15 = smov 0  }
   0x9   :  { %s3119_s16 = smov 0   ;;  %s3121_s17 = smov 0  }
   0xa LB: > { %3881 = sst [smem:[#allocation15_spill]] %s3074_s16  ;;  %s3142_s18 = sadd.s32 4294967295, %s3078_s17   ;;  %s3078_s17 = sphi %s3121_s17, %s22_s17   ;;  %s3074_s16 = sphi %s3119_s16, %s3922_s16   ;;  %s3070_s15 = sphi %s3117_s15, %s3917_s15   ;;  %s3066_s14 = sphi %s3115_s14, %s3921_s14   ;;  %s3062_s13 = sphi %s3113_s13, %s3920_s13   ;;  %s3058_s12 = sphi %s3111_s12, %s3919_s12  }
   0xb   : > { %s2531_s19 = sadd.s32 4294967294, %s3078_s17   ;;  %s41_s20 = sadd.s32 1, %s3074_s16 }
   0xc   : > { %s50_s21 = sadd.s32 1, %s3066_s14  ;;  %p43_p0 = scmp.ge.s32.totalorder %s41_s20, 2 }
   0xd   : > { %p57_p1 = scmp.ne.s32.totalorder %s3066_s14, %s3062_s13  ;;  %p58_p2 = scmp.eq.s32.totalorder %s3078_s17, 0 }
   0xe   : > { %p63_p3 = scmp.ne.s32.totalorder %s3062_s13, %s3058_s12  ;;  %s3924_s20 = smov (%p43_p0, %s41_s20), 0 }
   0xf   : > { %3882 = sst [smem:[#allocation16_spill]] %s3924_s20  ;;  %p3154_p4 = por %p58_p2, %p57_p1 }
  0x10   : > { %p64_p5 = scmp.eq.s32.totalorder %s3142_s18, 0  ;;  %s45_s23 = ssub.s32 %s3074_s16, %s3924_s20 }
  0x11   : > { %p145_p6 = scmp.eq.s32.totalorder %s3142_s18, 1  ;;  %p48_p7 = scmp.eq.s32.totalorder %s45_s23, 0 }
  0x12   : > { %p3162_p8 = por %p64_p5, %p63_p3  ;;  %p151_p10 = scmp.eq.s32.totalorder %s2531_s19, 1 }
  0x13   : > { %p3166_p9 = por %p145_p6, %p57_p1  ;;  %p2723_p13 = scmp.lt.s32.totalorder %s3078_s17, 2 }
  0x14   : > { %s3884_s24 = scalar_select %p3162_p8, 1, 0 }
  0x15   : > { %s3885_s25 = scalar_select %p3166_p9, 1, 0 }
  0x16   : > { %s3171_s26 = scalar_select %p48_p7, %s3066_s14, %s50_s21  }
  0x17   : > { %p3173_p11 = por %p151_p10, %p63_p3  ;;  %s3873_s28 = sand.u32 1, %s3066_s14  }
  0x18   : > { %3886 = sst [smem:[#allocation17_spill]] %s3171_s26  ;;  %s3182_s29 = sshll.u32 %s3873_s28, 6 }
  0x19   : > { %s3887_s27 = scalar_select %p3173_p11, 1, 0 }
  0x1a   : > { %s3185_s30 = sshll.u32 %s3074_s16, 10  ;;  %p3189_p0 = pnand %p2723_p13, %p3154_p4 }
  0x1b   : > { %s194_s5 = sand.u32 1, %s3078_s17   ;;  %s3889_s1 = sld [smem:[#allocation18_spill]] }
  0x1c   : > { %s198_s9 = scalar_lea.vmem [#allocation8], %s3182_s29  ;;  %s3205_s11 = scalar_lea.sflag [#allocation9], %s194_s5 }
  0x1d   : > { %s207_s10 = sshll.u32 %s198_s9, 4  ;;  %p3211_p4 = pneg %p3189_p0  ;;  %s3202_s10 = int_to_ptr.vmem [resolvable:$true] %s207_s10 }
  0x21   : > { %s3198_s8 = scalar_lea.hbm %s3889_s1, %s3185_s30  ;;  %s2907_s6 = scalar_lea.hbm %s3889_s1, 2048 }
  0x22   : > { %s2902_s19 = scalar_lea.hbm %s3198_s8, 1024  ;;  %p2908_p7 = scmp.lt.u32.totalorder %s3198_s8, %s3889_s1 }
  0x23   : > { %p2903_p3 = scmp.ne.s32.totalorder %s3198_s8, %s2902_s19  ;;  %p2909_p10 = scmp.lt.u32.totalorder %s2907_s6, %s2902_s19 }
  0x24   : > { %p2911_p12 = scmp.lt.u32.totalorder %s2902_s19, %s3198_s8 }
  0x25   : > { %p2905_p5 = pnand %p3211_p4, %p2903_p3  ;;  %p2910_p13 = por %p2909_p10, %p2908_p7 }
  0x27   : > { %p2906_p6 = pneg %p2905_p5  ;;  %p2912_p1 = por %p2911_p12, %p2910_p13 }
  0x29   : > { %p2913_p2 = pnand %p2912_p1, %p2906_p6 }
  0x2b   : > { %2916 = shalt.err (!%p2913_p2)
}
  0x2c   : > { %s2917_s5 = scalar_lea.vmem %s3202_s10, 1024  ;;  %s3080_s22 = smov [#allocation8]  }
  0x2d   : > { %p2918_p3 = scmp.ne.s32.totalorder %s3202_s10, %s2917_s5  ;;  %s2922_s23 = sshll.u32 %s3080_s22, 4  ;;  %s2923_s23 = int_to_ptr.vmem [resolvable:$false] %s2922_s23 }
  0x2e   : > { %s2924_s7 = scalar_lea.vmem %s2923_s23, 2048  ;;  %p2925_p9 = scmp.lt.s32.totalorder %s3202_s10, %s2923_s23 }
  0x2f   : > { %p2920_p5 = pnand %p2918_p3, %p3211_p4  ;;  %p2926_p8 = scmp.lt.s32.totalorder %s2924_s7, %s2917_s5 }
  0x31   : > { %p2921_p11 = pneg %p2920_p5  ;;  %p2927_p7 = por %p2926_p8, %p2925_p9 }
  0x33   : > { %p2928_p10 = pnand %p2927_p7, %p2921_p11 }
  0x35   : > { %2931 = shalt.err (!%p2928_p10)
}
  0x36   : > { %s3874_s19 = smov 64   ;;  %s3876_s6 = smov 4  }
  0x37   : > { %2715 = dma.hbm_to_vmem [thread:$0]  (!%p3189_p0), %s3198_s8, 1024, %s3202_s10, %s3205_s11, %s3874_s19, %s3874_s19, %s3876_s6  }
  0x38   : > { %p3891_p8 = scmp.lt.s32.totalorder %s3078_s17, 3  ;;  %p3892_p9 = scmp.ge.s32.totalorder %s3078_s17, 1 }
  0x39   : > { %s3250_s23 = scalar_lea.hbm %s3867_s0, %s3185_s30  ;;  %s175_s7 = scalar_lea.vmem [#allocation5], %s3182_s29 }
  0x3a   : > { %p3242_p11 = pnand %p3892_p9, %p3891_p8  ;;  %s184_s28 = sshll.u32 %s175_s7, 4  ;;  %s3253_s28 = int_to_ptr.vmem [resolvable:$true] %s184_s28 }
  0x3b   : > { %s3259_s19 = scalar_lea.hbm %s3869_s2, %s3185_s30  ;;  %s3894_s6 = sand.u32 1, %s3066_s14  }
  0x3c   : > { %s3893_s9 = scalar_select %p3242_p11, 1, 0 }
  0x3d   : > { %s3263_s1 = scalar_lea.sflag [#allocation6], %s3894_s6  ;;  %s2932_s20 = scalar_lea.hbm %s3250_s23, 1024 }
  0x3e   : > { %p2933_p12 = scmp.ne.s32.totalorder %s3250_s23, %s2932_s20  ;;  %s2937_s16 = scalar_lea.hbm %s3867_s0, 2048 }
  0x3f   : > { %p2938_p6 = scmp.lt.u32.totalorder %s3250_s23, %s3867_s0  ;;  %p2939_p13 = scmp.lt.u32.totalorder %s2937_s16, %s2932_s20 }
  0x40   : > { %p2935_p1 = pnand %p2933_p12, %p3211_p4  ;;  %p2941_p5 = scmp.lt.u32.totalorder %s2932_s20, %s3250_s23 }
  0x41   : > { %p2940_p3 = por %p2939_p13, %p2938_p6 }
  0x42   : > { %p2936_p2 = pneg %p2935_p1 }
  0x43   : > { %p2942_p7 = por %p2941_p5, %p2940_p3 }
  0x45   : > { %p2943_p10 = pnand %p2942_p7, %p2936_p2 }
  0x47   : > { %2946 = shalt.err (!%p2943_p10)
}
  0x48   : > { %s2947_s30 = scalar_lea.vmem %s3253_s28, 1024  ;;  %s3083_s6 = smov [#allocation5]  }
  0x49   : > { %p2948_p8 = scmp.ne.s32.totalorder %s3253_s28, %s2947_s30  ;;  %s2952_s8 = sshll.u32 %s3083_s6, 4  ;;  %s2953_s8 = int_to_ptr.vmem [resolvable:$false] %s2952_s8 }
  0x4a   : > { %s2954_s26 = scalar_lea.vmem %s2953_s8, 2048  ;;  %p2955_p1 = scmp.lt.s32.totalorder %s3253_s28, %s2953_s8 }
  0x4b   : > { %p2950_p9 = pnand %p2948_p8, %p3211_p4  ;;  %p2956_p11 = scmp.lt.s32.totalorder %s2954_s26, %s2947_s30 }
  0x4d   : > { %p2951_p12 = pneg %p2950_p9  ;;  %p2957_p6 = por %p2956_p11, %p2955_p1 }
  0x4f   : > { %p2958_p13 = pnand %p2957_p6, %p2951_p12 }
  0x51   : > { %2961 = shalt.err (!%p2958_p13)
}
  0x52   : > { %s3895_s16 = smov 4   ;;  %s3896_s20 = smov 64  }
  0x53   : > { %2712 = dma.hbm_to_vmem [thread:$0]  (!%p3189_p0), %s3250_s23, 1024, %s3253_s28, %s3263_s1, %s3896_s20, %s3896_s20, %s3895_s16  }
  0x54   : > { %s221_s10 = scalar_lea.vmem [#allocation10], %s3182_s29  ;;  %s2962_s22 = scalar_lea.hbm %s3259_s19, 1024 }
  0x55   : > { %s230_s5 = sshll.u32 %s221_s10, 4  ;;  %p2963_p11 = scmp.ne.s32.totalorder %s3259_s19, %s2962_s22  ;;  %s3291_s5 = int_to_ptr.vmem [resolvable:$true] %s230_s5 }
  0x56   : > { %s2967_s6 = scalar_lea.hbm %s3869_s2, 2048  ;;  %p2968_p5 = scmp.lt.u32.totalorder %s3259_s19, %s3869_s2 }
  0x57   : > { %p2965_p2 = pnand %p2963_p11, %p3211_p4  ;;  %p2969_p7 = scmp.lt.u32.totalorder %s2967_s6, %s2962_s22 }
  0x58   : > { %p2971_p8 = scmp.lt.u32.totalorder %s2962_s22, %s3259_s19 }
  0x59   : > { %p2966_p3 = pneg %p2965_p2  ;;  %p2970_p10 = por %p2969_p7, %p2968_p5 }
  0x5b   : > { %p2972_p9 = por %p2971_p8, %p2970_p10 }
  0x5d   : > { %p2973_p12 = pnand %p2972_p9, %p2966_p3 }
  0x5f   : > { %2976 = shalt.err (!%p2973_p12)
}
  0x60   : > { %s2977_s1 = scalar_lea.vmem %s3291_s5, 1024  ;;  %s3084_s28 = smov [#allocation10]  }
  0x61   : > { %p2978_p1 = scmp.ne.s32.totalorder %s3291_s5, %s2977_s1  ;;  %s2982_s29 = sshll.u32 %s3084_s28, 4  ;;  %s2983_s29 = int_to_ptr.vmem [resolvable:$false] %s2982_s29 }
  0x62   : > { %s2984_s23 = scalar_lea.vmem %s2983_s29, 2048  ;;  %p2985_p11 = scmp.lt.s32.totalorder %s3291_s5, %s2983_s29 }
  0x63   : > { %p2980_p6 = pnand %p2978_p1, %p3211_p4  ;;  %p2986_p2 = scmp.lt.s32.totalorder %s2984_s23, %s2977_s1 }
  0x65   : > { %p2981_p13 = pneg %p2980_p6  ;;  %p2987_p5 = por %p2986_p2, %p2985_p11 }
  0x67   : > { %p2988_p7 = pnand %p2987_p5, %p2981_p13 }
  0x69   : > { %2991 = shalt.err (!%p2988_p7)
}
  0x6a   : > { %2718 = dma.hbm_to_vmem [thread:$0]  (!%p3189_p0), %s3259_s19, 1024, %s3291_s5, %s3205_s11, %s3896_s20, %s3896_s20, %s3895_s16  }
  0x6b   : > { %p3897_p4 = scmp.ne.s32.totalorder %s3893_s9, 0 }
  0x6c   : > { %s3321_s21 = sand.u32 (!%p3897_p4), 1, %s3062_s13   ;;  %p3898_p3 = scmp.ne.s32.totalorder (!%p3897_p4), %s3884_s24, 0 }
  0x6d   : > { %242 = sbr.rel (%p3897_p4) target bundleno = 1045 (0x415), region = 32  ;;  %s3324_s10 = sshll.u32 (!%p3897_p4), %s3321_s21, 6 }
  0x6e   : > { %s245_s4 = scalar_lea.sflag (!%p3897_p4), [#allocation6], %s3321_s21  ;;  %s3328_s22 = scalar_lea.vmem (!%p3897_p4), [#allocation5], %s3324_s10 }
  0x74   : > { %3045 = dma.done.wait (%p3898_p3), %s245_s4, 1024  }
  0x75   : > { %3047 = vsyncadd (%p3898_p3), %s245_s4, 4294966272  ;;  %s253_s11 = sand.u32 1, %s3142_s18   ;;  %s257_s9 = scalar_lea.vmem [#allocation8], %s3324_s10 }
  0x76   : > { %s254_s19 = scalar_lea.sflag [#allocation9], %s253_s11 }
  0x77   : > { %3049 = dma.done.wait (%p3898_p3), %s254_s19, 2048  }
  0x78   : > { %3051 = vsyncadd (%p3898_p3), %s254_s19, 4294965248  ;;  %v2782_v0 = vld [vmem:[%s257_s9] sm:$0xff]   ;;  %v2783_v1 = vld [vmem:[%s257_s9 + $0x8] sm:$0xff]   ;;  %vm308_vm0 = vcmask 7168   ;;  %v3085_v16 = vmov -inf   ;;  %v599_v17 = vlaneseq  ;;  %v3086_v37 = vmov 0  }
  0x79   : > { %2637 = vmatprep.subr.bf16.mxu0 %v2782_v0  ;;  %v2784_v2 = vld [vmem:[%s257_s9 + $0x10] sm:$0xff]   ;;  %v2790_v3 = vld [vmem:[%s3328_s22] sm:$0xff]   ;;  %v2785_v4 = vld [vmem:[%s257_s9 + $0x18] sm:$0xff]   ;;  %311 = vst.msk [vmem:[#allocation2 + $0x10] sm:$0xff] %vm308_vm0, %v3085_v16  ;;  %2781 = vset.pattern.permute.xlu1 %v3086_v37  ;;  %v3087_v46 = vmov 0.0   ;;  %s3464_s18 = scalar_lea.vmem [#allocation10], %s3324_s10 }
  0x7a   : > { %2638 = vmatpush3.bf16.xpose.msra.mxu0 %v2782_v0  ;;  %2653 = vmatprep.mubr.bf16.mxu0 %v2790_v3  ;;  %v2786_v5 = vld [vmem:[%s257_s9 + $0x20] sm:$0xff]   ;;  %v2787_v6 = vld [vmem:[%s257_s9 + $0x28] sm:$0xff]   ;;  %v2788_v7 = vld [vmem:[%s257_s9 + $0x30] sm:$0xff]   ;;  %309 = vst.msk [vmem:[#allocation2] sm:$0xff] %vm308_vm0, %v3085_v16  ;;  %v3364_v18 = vand.u32 127, %v599_v17  ;;  %s2547_s24 = sshll.u32 %s3321_s21, 7 }
  0x7b   : > { %2639 = vmatprep.subr.bf16.mxu0 %v2783_v1  ;;  %v2789_v8 = vld [vmem:[%s257_s9 + $0x38] sm:$0xff]   ;;  %v2791_v9 = vld [vmem:[%s3328_s22 + $0x8] sm:$0xff]   ;;  %v2792_v10 = vld [vmem:[%s3328_s22 + $0x10] sm:$0xff]   ;;  %310 = vst.msk [vmem:[#allocation2 + $0x8] sm:$0xff] %vm308_vm0, %v3085_v16  ;;  %2780 = vset.pattern.permute.xlu0 %v3086_v37  ;;  %s3783_s16 = scalar_lea.vmem [#allocation11], %s2547_s24  ;;  %s2604_s20 = sshll.u32 %s3070_s15, 11 }
  0x7c   : > { %v2793_v11 = vld [vmem:[%s3328_s22 + $0x18] sm:$0xff]   ;;  %v2794_v12 = vld [vmem:[%s3328_s22 + $0x20] sm:$0xff]   ;;  %v2795_v13 = vld [vmem:[%s3328_s22 + $0x28] sm:$0xff]   ;;  %312 = vst.msk [vmem:[#allocation2 + $0x18] sm:$0xff] %vm308_vm0, %v3085_v16  ;;  %vm603_vm1 = vcmp.lt.s32.totalorder %v3364_v18, 8  ;;  %s2391_s5 = sshll.u32 %s3783_s16, 4  ;;  %s3814_s6 = scalar_lea.hbm %s3870_s3, %s2604_s20  ;;  %s3816_s5 = int_to_ptr.vmem [resolvable:$true] %s2391_s5 }
  0x7d   : > { %v2796_v14 = vld [vmem:[%s3328_s22 + $0x30] sm:$0xff]   ;;  %v2797_v15 = vld [vmem:[%s3328_s22 + $0x38] sm:$0xff]   ;;  %313 = vst.msk [vmem:[#allocation2 + $0x20] sm:$0xff] %vm308_vm0, %v3085_v16  ;;  %314 = vst.msk [vmem:[#allocation2 + $0x28] sm:$0xff] %vm308_vm0, %v3085_v16  ;;  %s2376_s15 = scalar_lea.sflag [#allocation7], %s3321_s21  ;;  %s2992_s8 = scalar_lea.vmem %s3816_s5, 2048 }
  0x7e   : > { %315 = vst.msk [vmem:[#allocation2 + $0x30] sm:$0xff] %vm308_vm0, %v3085_v16  ;;  %316 = vst.msk [vmem:[#allocation2 + $0x38] sm:$0xff] %vm308_vm0, %v3085_v16  ;;  %v2798_v53 = vld [vmem:[%s3464_s18] sm:$0xff]   ;;  %v2799_v54 = vld [vmem:[%s3464_s18 + $0x8] sm:$0xff]   ;;  %p2993_p0 = scmp.ne.s32.totalorder %s3816_s5, %s2992_s8  ;;  %p3913_p10 = scmp.ne.s32.totalorder %s3885_s25, 0 }
  0x7f   : > { %317 = vst.msk [vmem:[#allocation2 + $0x40] sm:$0xff] %vm308_vm0, %v3085_v16  ;;  %318 = vst.msk [vmem:[#allocation2 + $0x48] sm:$0xff] %vm308_vm0, %v3085_v16  ;;  %2669 = vmatprep.subr.bf16.mxu1 %v2798_v53  ;;  %v2800_v0 = vld [vmem:[%s3464_s18 + $0x10] sm:$0xff]   ;;  %s3088_s26 = smov [#allocation11]  }
  0x80   : > { %319 = vst.msk [vmem:[#allocation2 + $0x50] sm:$0xff] %vm308_vm0, %v3085_v16  ;;  %320 = vst.msk [vmem:[#allocation2 + $0x58] sm:$0xff] %vm308_vm0, %v3085_v16  ;;  %2670 = vmatpush3.bf16.msra.mxu1 %v2798_v53  ;;  %v3468_v55 = vld [vmem:[#allocation2 + $0x10] sm:$0xff]  ;;  %p2994_p8 = pnand %p2993_p0, %p3913_p10  ;;  %s2996_s1 = sshll.u32 %s3088_s26, 4  ;;  %s2997_s1 = int_to_ptr.vmem [resolvable:$false] %s2996_s1 }
  0x81   : > { %321 = vst.msk [vmem:[#allocation2 + $0x60] sm:$0xff] %vm308_vm0, %v3085_v16  ;;  %322 = vst.msk [vmem:[#allocation2 + $0x68] sm:$0xff] %vm308_vm0, %v3085_v16  ;;  %2671 = vmatprep.subr.bf16.mxu1 %v2799_v54  ;;  %v3470_v56 = vld [vmem:[#allocation2] sm:$0xff]  ;;  %s2998_s28 = scalar_lea.vmem %s2997_s1, 4096  ;;  %p2999_p12 = scmp.lt.s32.totalorder %s3816_s5, %s2997_s1 }
  0x82   : > { %2640 = vmatpush3.bf16.xpose.msra.mxu0 %v2783_v1  ;;  %323 = vst.msk [vmem:[#allocation2 + $0x70] sm:$0xff] %vm308_vm0, %v3085_v16  ;;  %324 = vst.msk [vmem:[#allocation2 + $0x78] sm:$0xff] %vm308_vm0, %v3085_v16  ;;  %v3485_v63 = vld [vmem:[#allocation2 + $0x8] sm:$0xff]  ;;  %v2802_v16 = vld [vmem:[%s3464_s18 + $0x20] sm:$0xff]   ;;  %p2995_p9 = pneg %p2994_p8  ;;  %p3000_p1 = scmp.lt.s32.totalorder %s2998_s28, %s2992_s8 }
  0x83   : > { %2641 = vmatprep.subr.bf16.mxu0 %v2784_v2  ;;  %327 = vst.msk [vmem:[#allocation3 + $0x10] sm:$0xff] %vm308_vm0, %v3087_v46  ;;  %325 = vst.msk [vmem:[#allocation3] sm:$0xff] %vm308_vm0, %v3087_v46  ;;  %v3478_v61 = vld [vmem:[#allocation2 + $0x18] sm:$0xff] }
  0x84   : > { %326 = vst.msk [vmem:[#allocation3 + $0x8] sm:$0xff] %vm308_vm0, %v3087_v46  ;;  %328 = vst.msk [vmem:[#allocation3 + $0x18] sm:$0xff] %vm308_vm0, %v3087_v46  ;;  %2672 = vmatpush3.bf16.msra.mxu1 %v2799_v54  ;;  %v3527_v18 = vld [vmem:[#allocation2 + $0x28] sm:$0xff]  ;;  %p3001_p6 = por %p3000_p1, %p2999_p12 }
  0x85   : > { %329 = vst.msk [vmem:[#allocation3 + $0x20] sm:$0xff] %vm308_vm0, %v3087_v46  ;;  %330 = vst.msk [vmem:[#allocation3 + $0x28] sm:$0xff] %vm308_vm0, %v3087_v46  ;;  %2673 = vmatprep.subr.bf16.mxu1 %v2800_v0 }
  0x86   : > { %331 = vst.msk [vmem:[#allocation3 + $0x30] sm:$0xff] %vm308_vm0, %v3087_v46  ;;  %332 = vst.msk [vmem:[#allocation3 + $0x38] sm:$0xff] %vm308_vm0, %v3087_v46  ;;  %p3002_p13 = pnand %p3001_p6, %p2995_p9 }
  0x87   : > { %333 = vst.msk [vmem:[#allocation3 + $0x40] sm:$0xff] %vm308_vm0, %v3087_v46  ;;  %334 = vst.msk [vmem:[#allocation3 + $0x48] sm:$0xff] %vm308_vm0, %v3087_v46 }
  0x88   : > { %335 = vst.msk [vmem:[#allocation3 + $0x50] sm:$0xff] %vm308_vm0, %v3087_v46  ;;  %336 = vst.msk [vmem:[#allocation3 + $0x58] sm:$0xff] %vm308_vm0, %v3087_v46  ;;  %2674 = vmatpush3.bf16.msra.mxu1 %v2800_v0 }
  0x89   : > { %337 = vst.msk [vmem:[#allocation3 + $0x60] sm:$0xff] %vm308_vm0, %v3087_v46  ;;  %338 = vst.msk [vmem:[#allocation3 + $0x68] sm:$0xff] %vm308_vm0, %v3087_v46 }
  0x8a   : > { %2642 = vmatpush3.bf16.xpose.msra.mxu0 %v2784_v2  ;;  %339 = vst.msk [vmem:[#allocation3 + $0x70] sm:$0xff] %vm308_vm0, %v3087_v46  ;;  %340 = vst.msk [vmem:[#allocation3 + $0x78] sm:$0xff] %vm308_vm0, %v3087_v46  ;;  %v2804_v46 = vld [vmem:[%s3464_s18 + $0x30] sm:$0xff]  }
  0x8b   : > { %2643 = vmatprep.subr.bf16.mxu0 %v2785_v4 }
  0x92   : > { %2644 = vmatpush3.bf16.xpose.msra.mxu0 %v2785_v4 }
  0x93   : > { %2645 = vmatprep.subr.bf16.mxu0 %v2786_v5 }
  0x9a   : > { %2646 = vmatpush3.bf16.xpose.msra.mxu0 %v2786_v5 }
  0x9b   : > { %2647 = vmatprep.subr.bf16.mxu0 %v2787_v6 }
  0xa2   : > { %2648 = vmatpush3.bf16.xpose.msra.mxu0 %v2787_v6 }
  0xa3   : > { %2649 = vmatprep.subr.bf16.mxu0 %v2788_v7 }
  0xaa   : > { %2650 = vmatpush3.bf16.xpose.msra.mxu0 %v2788_v7  ;;  %v3504_v7 = vld [vmem:[#allocation2 + $0x20] sm:$0xff] }
  0xab   : > { %2651 = vmatprep.subr.bf16.mxu0 %v2789_v8 }
  0xb2   : > { %2652 = vmatpush3.bf16.xpose.msra.mxu0 %v2789_v8  ;;  %v2801_v8 = vld [vmem:[%s3464_s18 + $0x18] sm:$0xff]  }
  0xb3   : > { %2675 = vmatprep.subr.bf16.mxu1 %v2801_v8 }
  0xb4   : > { %2676 = vmatpush3.bf16.msra.mxu1 %v2801_v8 }
  0xb5   : > { %2677 = vmatprep.subr.bf16.mxu1 %v2802_v16 }
  0xb8   : > { %2678 = vmatpush3.bf16.msra.mxu1 %v2802_v16 }
  0xb9   : > { %2654 = vmatmul.mubr.bf16.vlgmr.msra.gmra.mrb[0].mxu0 %v2791_v9 }
  0xba   : > { %2657 = vmatprep.mubr.bf16.mxu0 %v2792_v10  ;;  %v3511_v10 = vld [vmem:[#allocation2 + $0x38] sm:$0xff] }
  0xc1   : > { %2658 = vmatmul.mubr.bf16.gmra.mrb[4].mxu0 %v2793_v11 }
  0xc2   : > { %2661 = vmatprep.mubr.bf16.mxu0 %v2794_v12 }
  0xc9   : > { %2662 = vmatmul.mubr.bf16.gmra.mrb[8].mxu0 %v2795_v13 }
  0xca   : > { %2665 = vmatprep.mubr.bf16.mxu0 %v2796_v14 }
  0xd1   : > { %2666 = vmatmul.mubr.bf16.gmra.mrb[12].mxu0 %v2797_v15  ;;  %v3520_v15 = vld [vmem:[#allocation2 + $0x30] sm:$0xff] }
 0x18c   : > { %v2655_v19 = vpop.f32.mrb[0].mxu0 }
 0x18d   : > { %v535_v20 = vpop.f32.mrb[1].mxu0  ;;  %v3369_v21 = vsel %vm603_vm1, %v2655_v19, -inf }
 0x18e   : > { %640 = vmax.xlane.f32.xlu1 %v3369_v21  ;;  %v2656_v22 = vpop.f32.mrb[2].mxu0  ;;  %v3374_v23 = vsel %vm603_vm1, %v535_v20, -inf }
 0x18f   : > { %636 = vmax.xlane.f32.xlu0 %v3374_v23  ;;  %v538_v24 = vpop.f32.mrb[3].mxu0  ;;  %v3379_v25 = vsel %vm603_vm1, %v2656_v22, -inf }
 0x190   : > { %v3384_v26 = vsel %vm603_vm1, %v538_v24, -inf }
 0x192   : > { %642 = vmax.xlane.f32.xlu1 %v3379_v25 }
 0x193   : > { %638 = vmax.xlane.f32.xlu0 %v3384_v26 }
 0x194   : > { %v2659_v27 = vpop.f32.mrb[4].mxu0 }
 0x195   : > { %v551_v28 = vpop.f32.mrb[5].mxu0  ;;  %v3399_v33 = vsel %vm603_vm1, %v2659_v27, -inf }
 0x196   : > { %v2660_v29 = vpop.f32.mrb[6].mxu0  ;;  %v3389_v30 = vsel %vm603_vm1, %v551_v28, -inf  ;;  %v3539_v28 = vld [vmem:[#allocation2 + $0x40] sm:$0xff] }
 0x197   : > { %644 = vmax.xlane.f32.xlu0 %v3389_v30  ;;  %v554_v31 = vpop.f32.mrb[7].mxu0  ;;  %v3394_v32 = vsel %vm603_vm1, %v2660_v29, -inf  ;;  %v2803_v29 = vld [vmem:[%s3464_s18 + $0x28] sm:$0xff]  }
 0x198   : > { %650 = vmax.xlane.f32.xlu1 %v3394_v32  ;;  %v3404_v34 = vsel %vm603_vm1, %v554_v31, -inf  ;;  %2679 = vmatprep.subr.bf16.mxu1 %v2803_v29 }
 0x199   : > { %2680 = vmatpush3.bf16.msra.mxu1 %v2803_v29 }
 0x19a   : > { %2681 = vmatprep.subr.bf16.mxu1 %v2804_v46 }
 0x19b   : > { %648 = vmax.xlane.f32.xlu0 %v3399_v33 }
 0x19c   : > { %646 = vmax.xlane.f32.xlu1 %v3404_v34  ;;  %v2663_v35 = vpop.f32.mrb[8].mxu0 }
 0x19d   : > { %v567_v36 = vpop.f32.mrb[9].mxu0  ;;  %v3419_v42 = vsel %vm603_vm1, %v2663_v35, -inf  ;;  %v3547_v35 = vld [vmem:[#allocation2 + $0x58] sm:$0xff]  ;;  %2682 = vmatpush3.bf16.msra.mxu1 %v2804_v46 }
 0x19e   : > { %v2664_v38 = vpop.f32.mrb[10].mxu0  ;;  %v3409_v39 = vsel %vm603_vm1, %v567_v36, -inf }
 0x19f   : > { %v3413_v40 = vsel %vm603_vm1, %v2664_v38, -inf  ;;  %652 = vmax.xlane.f32.xlu0 %v3409_v39  ;;  %v570_v41 = vpop.f32.mrb[11].mxu0 }
 0x1a0   : > { %658 = vmax.xlane.f32.xlu1 %v3413_v40  ;;  %v3423_v43 = vsel %vm603_vm1, %v570_v41, -inf }
 0x1a3   : > { %656 = vmax.xlane.f32.xlu0 %v3419_v42 }
 0x1a4   : > { %654 = vmax.xlane.f32.xlu1 %v3423_v43  ;;  %v2667_v44 = vpop.f32.mrb[12].mxu0 }
 0x1a5   : > { %v583_v45 = vpop.f32.mrb[13].mxu0  ;;  %v3455_v51 = vsel %vm603_vm1, %v2667_v44, -inf }
 0x1a6   : > { %v2668_v47 = vpop.f32.mrb[14].mxu0  ;;  %v3445_v48 = vsel %vm603_vm1, %v583_v45, -inf  ;;  %v3559_v45 = vld [vmem:[#allocation2 + $0x50] sm:$0xff] }
 0x1a7   : > { %v3449_v49 = vsel %vm603_vm1, %v2668_v47, -inf  ;;  %v586_v50 = vpop.f32.mrb[15].mxu0  ;;  %660 = vmax.xlane.f32.xlu0 %v3445_v48 }
 0x1a8   : > { %666 = vmax.xlane.f32.xlu1 %v3449_v49  ;;  %v3459_v52 = vsel %vm603_vm1, %v586_v50, -inf  ;;  %v3567_v50 = vld [vmem:[#allocation2 + $0x48] sm:$0xff] }
 0x1ab   : > { %664 = vmax.xlane.f32.xlu0 %v3455_v51 }
 0x1ac   : > { %662 = vmax.xlane.f32.xlu1 %v3459_v52 }
 0x21b   : > { %v641_v57 = vpop.xlane.xlu1 %640 }
 0x21c   : > { %v3473_v58 = vmax.f32 %v3468_v55, %v641_v57  ;;  %v637_v59 = vpop.xlane.xlu0 %636 }
 0x21d   : > { %v3476_v60 = vmax.f32 %v3470_v56, %v637_v59 }
 0x21e   : > { %v686_v62 = vsub.f32 %v3468_v55, %v3473_v58  ;;  %1255 = vst.msk [vmem:[#allocation2 + $0x10] sm:$0xff] %vm308_vm0, %v3473_v58  ;;  %744 = vperm.xlu1 %2781, %v3473_v58  }
 0x21f   : > { %1253 = vst.msk [vmem:[#allocation2] sm:$0xff] %vm308_vm0, %v3476_v60  ;;  %v643_v2 = vpop.xlane.xlu1 %642  ;;  %734 = vperm.xlu0 %2780, %v3476_v60  }
 0x220   : > { %v3494_v3 = vmax.f32 %v3478_v61, %v643_v2  ;;  %v639_v4 = vpop.xlane.xlu0 %638  ;;  %v3579_v2 = vld [vmem:[#allocation2 + $0x60] sm:$0xff] }
 0x221   : > { %v3497_v5 = vmax.f32 %v3485_v63, %v639_v4  ;;  %v2805_v4 = vld [vmem:[%s3464_s18 + $0x38] sm:$0xff]  }
 0x222   : > { %1256 = vst.msk [vmem:[#allocation2 + $0x18] sm:$0xff] %vm308_vm0, %v3494_v3  ;;  %749 = vperm.xlu1 %2781, %v3494_v3   ;;  %2683 = vmatprep.subr.bf16.mxu1 %v2805_v4 }
 0x223   : > { %v685_v9 = vsub.f32 %v3485_v63, %v3497_v5  ;;  %1254 = vst.msk [vmem:[#allocation2 + $0x8] sm:$0xff] %vm308_vm0, %v3497_v5  ;;  %2684 = vmatpush3.bf16.msra.mxu1 %v2805_v4 }
 0x224   : > { %v645_v11 = vpop.xlane.xlu0 %644 }
 0x225   : > { %v3514_v12 = vmax.f32 %v3504_v7, %v645_v11  ;;  %v651_v13 = vpop.xlane.xlu1 %650  ;;  %v3587_v11 = vld [vmem:[#allocation2 + $0x78] sm:$0xff] }
 0x226   : > { %v3517_v14 = vmax.f32 %v3511_v10, %v651_v13  ;;  %739 = vperm.xlu1 %2781, %v3497_v5  }
 0x227   : > { %1257 = vst.msk [vmem:[#allocation2 + $0x20] sm:$0xff] %vm308_vm0, %v3514_v12 }
 0x228   : > { %1260 = vst.msk [vmem:[#allocation2 + $0x38] sm:$0xff] %vm308_vm0, %v3517_v14  ;;  %v649_v20 = vpop.xlane.xlu0 %648 }
 0x229   : > { %v3534_v22 = vmax.f32 %v3520_v15, %v649_v20  ;;  %v647_v24 = vpop.xlane.xlu1 %646 }
 0x22a   : > { %v3537_v27 = vmax.f32 %v3527_v18, %v647_v24 }
 0x22b   : > { %1259 = vst.msk [vmem:[#allocation2 + $0x30] sm:$0xff] %vm308_vm0, %v3534_v22  ;;  %764 = vperm.xlu1 %2781, %v3534_v22   ;;  %v3902_v55 = vsub.f32 %v3520_v15, %v3534_v22 }
 0x22c   : > { %1258 = vst.msk [vmem:[#allocation2 + $0x28] sm:$0xff] %vm308_vm0, %v3537_v27  ;;  %v653_v37 = vpop.xlane.xlu0 %652 }
 0x22d   : > { %v659_v38 = vpop.xlane.xlu1 %658  ;;  %v3554_v41 = vmax.f32 %v3539_v28, %v653_v37  ;;  %v3600_v37 = vld [vmem:[#allocation2 + $0x70] sm:$0xff]  ;;  %v712_v58 = vmul.f32 1.442695, %v3902_v55 }
 0x22e   : > { %v3557_v44 = vmax.f32 %v3547_v35, %v659_v38  ;;  %v3603_v38 = vld [vmem:[#allocation2 + $0x68] sm:$0xff] }
 0x22f   : > { %1261 = vst.msk [vmem:[#allocation2 + $0x40] sm:$0xff] %vm308_vm0, %v3554_v41  ;;  %754 = vperm.xlu1 %2781, %v3514_v12   ;;  %v3904_v5 = vsub.f32 %v3539_v28, %v3554_v41 }
 0x230   : > { %1264 = vst.msk [vmem:[#allocation2 + $0x58] sm:$0xff] %vm308_vm0, %v3557_v44  ;;  %v657_v54 = vpop.xlane.xlu0 %656 }
 0x231   : > { %v655_v57 = vpop.xlane.xlu1 %654  ;;  %v3574_v59 = vmax.f32 %v3559_v45, %v657_v54 }
 0x232   : > { %v3577_v0 = vmax.f32 %v3567_v50, %v655_v57 }
 0x233   : > { %1263 = vst.msk [vmem:[#allocation2 + $0x50] sm:$0xff] %vm308_vm0, %v3574_v59  ;;  %759 = vperm.xlu1 %2781, %v3537_v27   ;;  %v3906_v15 = vsub.f32 %v3559_v45, %v3574_v59  ;;  %v3909_v45 = vsub.f32 %v3547_v35, %v3557_v44 }
 0x234   : > { %1262 = vst.msk [vmem:[#allocation2 + $0x48] sm:$0xff] %vm308_vm0, %v3577_v0  ;;  %779 = vperm.xlu0 %2780, %v3577_v0   ;;  %v661_v16 = vpop.xlane.xlu0 %660  ;;  %v3907_v22 = vsub.f32 %v3567_v50, %v3577_v0 }
 0x235   : > { %v667_v20 = vpop.xlane.xlu1 %666  ;;  %v3595_v24 = vmax.f32 %v3579_v2, %v661_v16 }
 0x236   : > { %v3598_v29 = vmax.f32 %v3587_v11, %v667_v20 }
 0x237   : > { %769 = vperm.xlu1 %2781, %v3517_v14   ;;  %1265 = vst.msk [vmem:[#allocation2 + $0x60] sm:$0xff] %vm308_vm0, %v3595_v24 }
 0x238   : > { %1268 = vst.msk [vmem:[#allocation2 + $0x78] sm:$0xff] %vm308_vm0, %v3598_v29  ;;  %789 = vperm.xlu0 %2780, %v3557_v44   ;;  %v665_v57 = vpop.xlane.xlu0 %664  ;;  %v3912_v44 = vsub.f32 %v3587_v11, %v3598_v29 }
 0x239   : > { %v663_v4 = vpop.xlane.xlu1 %662  ;;  %v3615_v16 = vmax.f32 %v3600_v37, %v665_v57 }
 0x23a   : > { %v3618_v20 = vmax.f32 %v3603_v38, %v663_v4 }
 0x23b   : > { %774 = vperm.xlu1 %2781, %v3554_v41   ;;  %1267 = vst.msk [vmem:[#allocation2 + $0x70] sm:$0xff] %vm308_vm0, %v3615_v16  ;;  %v3910_v50 = vsub.f32 %v3600_v37, %v3615_v16  ;;  %v730_v37 = vmul.f32 1.442695, %v3912_v44 }
 0x23c   : > { %1266 = vst.msk [vmem:[#allocation2 + $0x68] sm:$0xff] %vm308_vm0, %v3618_v20  ;;  %799 = vperm.xlu0 %2780, %v3618_v20  }
 0x23d   : > { %v728_v0 = vmul.f32 1.442695, %v3910_v50  ;;  %v870_v50 = vld [vmem:[#allocation3 + $0x50] sm:$0xff] }
 0x23f   : > { %784 = vperm.xlu1 %2781, %v3574_v59   ;;  %v722_v59 = vmul.f32 1.442695, %v3909_v45 }
 0x240   : > { %809 = vperm.xlu0 %2780, %v3598_v29  }
 0x243   : > { %794 = vperm.xlu1 %2781, %v3595_v24  }
 0x247   : > { %804 = vperm.xlu1 %2781, %v3615_v16  }
 0x29d   : > { %v745_v57 = vpop.permute.xlu1 %744 }
 0x29e   : > { %v814_v4 = vsub.f32 %v3369_v21, %v745_v57  ;;  %v735_v53 = vpop.permute.xlu0 %734 }
 0x29f   : > { %v812_v46 = vsub.f32 %v3374_v23, %v735_v53 }
 0x2a0   : > { %v832_v54 = vmul.f32 1.442695, %v814_v4 }
 0x2a1   : > { %v828_v13 = vmul.f32 1.442695, %v812_v46  ;;  %v750_v8 = vpop.permute.xlu1 %749 }
 0x2a2   : > { %2806 = vpow2.f32 %v832_v54  ;;  %v815_v19 = vsub.f32 %v3379_v25, %v750_v8 }
 0x2a3   : > { %2808 = vpow2.f32 %v828_v13 }
 0x2a4   : > { %v834_v47 = vmul.f32 1.442695, %v815_v19 }
 0x2a5   : > { %v740_v36 = vpop.permute.xlu1 %739 }
 0x2a6   : > { %2810 = vpow2.f32 %v834_v47  ;;  %v813_v31 = vsub.f32 %v3384_v26, %v740_v36 }
 0x2a8   : > { %v830_v6 = vmul.f32 1.442695, %v813_v31 }
 0x2aa   : > { %2812 = vpow2.f32 %v830_v6  ;;  %v765_v17 = vpop.permute.xlu1 %764 }
 0x2ab   : > { %v818_v21 = vsub.f32 %v3399_v33, %v765_v17 }
 0x2ac   : > { %v2807_v57 = vpop.eup %2806 }
 0x2ad   : > { %v2809_v1 = vpop.eup %2808  ;;  %v840_v23 = vmul.f32 1.442695, %v818_v21  ;;  %896 = vadd.xlane.f32.xlu0 %v2807_v57 }
 0x2ae   : > { %v755_v53 = vpop.permute.xlu1 %754  ;;  %892 = vadd.xlane.f32.xlu1 %v2809_v1 }
 0x2af   : > { %2814 = vpow2.f32 %v840_v23  ;;  %v816_v25 = vsub.f32 %v3389_v30, %v755_v53 }
 0x2b0   : > { %v2811_v8 = vpop.eup %2810 }
 0x2b1   : > { %v836_v19 = vmul.f32 1.442695, %v816_v25  ;;  %v1069_v46 = vpack.c.bf16 %v2811_v8, %v2807_v57 }
 0x2b2   : > { %v760_v13 = vpop.permute.xlu1 %759  ;;  %898 = vadd.xlane.f32.xlu1 %v2811_v8 }
 0x2b3   : > { %2816 = vpow2.f32 %v836_v19  ;;  %v817_v26 = vsub.f32 %v3404_v34, %v760_v13  ;;  %v780_v6 = vpop.permute.xlu0 %779 }
 0x2b4   : > { %v2813_v31 = vpop.eup %2812  ;;  %v821_v17 = vsub.f32 %v3423_v43, %v780_v6 }
 0x2b5   : > { %v838_v36 = vmul.f32 1.442695, %v817_v26  ;;  %894 = vadd.xlane.f32.xlu0 %v2813_v31  ;;  %v1068_v33 = vpack.c.bf16 %v2813_v31, %v2809_v1 }
 0x2b6   : > { %v770_v47 = vpop.permute.xlu1 %769  ;;  %v846_v23 = vmul.f32 1.442695, %v821_v17 }
 0x2b7   : > { %2818 = vpow2.f32 %v838_v36  ;;  %v819_v54 = vsub.f32 %v3394_v32, %v770_v47  ;;  %2685 = vmatprep.mubr.bf16.mxu1 %v1068_v33  ;;  %v790_v30 = vpop.permute.xlu0 %789 }
 0x2b8   : > { %2686 = vmatmul.mubr.bf16.vlgmr.msra.gmra.mrb[0].mxu1 %v1069_v46  ;;  %v823_v34 = vsub.f32 %v3413_v40, %v790_v30 }
 0x2b9   : > { %v2815_v4 = vpop.eup %2814  ;;  %v842_v21 = vmul.f32 1.442695, %v819_v54 }
 0x2ba   : > { %v775_v53 = vpop.permute.xlu1 %774  ;;  %904 = vadd.xlane.f32.xlu0 %v2815_v4  ;;  %v850_v57 = vmul.f32 1.442695, %v823_v34 }
 0x2bb   : > { %2820 = vpow2.f32 %v842_v21  ;;  %v820_v1 = vsub.f32 %v3409_v39, %v775_v53  ;;  %v800_v25 = vpop.permute.xlu0 %799 }
 0x2bc   : > { %2822 = vpow2.f32 %v846_v23  ;;  %v825_v32 = vsub.f32 %v3459_v52, %v800_v25 }
 0x2bd   : > { %v2817_v43 = vpop.eup %2816  ;;  %v844_v19 = vmul.f32 1.442695, %v820_v1 }
 0x2be   : > { %v785_v8 = vpop.permute.xlu1 %784  ;;  %900 = vadd.xlane.f32.xlu0 %v2817_v43  ;;  %v854_v31 = vmul.f32 1.442695, %v825_v32  ;;  %v702_v32 = vmul.f32 1.442695, %v685_v9 }
 0x2bf   : > { %2824 = vpow2.f32 %v844_v19  ;;  %v822_v13 = vsub.f32 %v3419_v42, %v785_v8  ;;  %v810_v26 = vpop.permute.xlu0 %809  ;;  %v704_v8 = vmul.f32 1.442695, %v686_v62 }
 0x2c0   : > { %2826 = vpow2.f32 %v850_v57  ;;  %v827_v36 = vsub.f32 %v3449_v49, %v810_v26 }
 0x2c1   : > { %v2819_v6 = vpop.eup %2818  ;;  %v848_v40 = vmul.f32 1.442695, %v822_v13  ;;  %v3899_v13 = vsub.f32 %v3470_v56, %v3476_v60  ;;  %v3903_v56 = vsub.f32 %v3527_v18, %v3537_v27  ;;  %v720_v18 = vmul.f32 1.442695, %v3906_v15  ;;  %v865_v15 = vld [vmem:[#allocation3 + $0x28] sm:$0xff] }
 0x2c2   : > { %v795_v39 = vpop.permute.xlu1 %794  ;;  %v1070_v33 = vpack.c.bf16 %v2819_v6, %v2817_v43  ;;  %v858_v46 = vmul.f32 1.442695, %v827_v36  ;;  %v718_v27 = vmul.f32 1.442695, %v3907_v22 }
 0x2c3   : > { %2828 = vpow2.f32 %v848_v40  ;;  %v824_v17 = vsub.f32 %v3445_v48, %v795_v39  ;;  %v700_v26 = vmul.f32 1.442695, %v3899_v13  ;;  %v710_v60 = vmul.f32 1.442695, %v3903_v56 }
 0x2c4   : > { %2689 = vmatprep.mubr.bf16.mxu1 %v1070_v33  ;;  %2830 = vpow2.f32 %v854_v31  ;;  %v3901_v31 = vsub.f32 %v3478_v61, %v3494_v3  ;;  %v716_v61 = vmul.f32 1.442695, %v3904_v5  ;;  %v3905_v3 = vsub.f32 %v3511_v10, %v3517_v14 }
 0x2c5   : > { %v2821_v47 = vpop.eup %2820  ;;  %v852_v52 = vmul.f32 1.442695, %v824_v17  ;;  %v3908_v10 = vsub.f32 %v3579_v2, %v3595_v24  ;;  %v3911_v2 = vsub.f32 %v3603_v38, %v3618_v20 }
 0x2c6   : > { %v805_v54 = vpop.permute.xlu1 %804  ;;  %906 = vadd.xlane.f32.xlu1 %v2821_v47  ;;  %v1071_v42 = vpack.c.bf16 %v2821_v47, %v2815_v4  ;;  %v2823_v21 = vpop.eup %2822  ;;  %v706_v63 = vmul.f32 1.442695, %v3901_v31 }
 0x2c7   : > { %2832 = vpow2.f32 %v852_v52  ;;  %v826_v30 = vsub.f32 %v3455_v51, %v805_v54  ;;  %v724_v14 = vmul.f32 1.442695, %v3908_v10  ;;  %v726_v24 = vmul.f32 1.442695, %v3911_v2  ;;  %v862_v52 = vld [vmem:[#allocation3 + $0x10] sm:$0xff] }
 0x2c8   : > { %2690 = vmatmul.mubr.bf16.gmra.mrb[4].mxu1 %v1071_v42  ;;  %2834 = vpow2.f32 %v858_v46  ;;  %v860_v46 = vld [vmem:[#allocation3] sm:$0xff] }
 0x2c9   : > { %v2825_v23 = vpop.eup %2824  ;;  %v856_v49 = vmul.f32 1.442695, %v826_v30 }
 0x2ca   : > { %902 = vadd.xlane.f32.xlu1 %v2819_v6  ;;  %v1072_v34 = vpack.c.bf16 %v2823_v21, %v2825_v23  ;;  %v2827_v48 = vpop.eup %2826  ;;  %v3900_v6 = vsub.f32 %v3504_v7, %v3514_v12  ;;  %v714_v7 = vmul.f32 1.442695, %v3905_v3 }
 0x2cb   : > { %2836 = vpow2.f32 %v856_v49  ;;  %v863_v49 = vld [vmem:[#allocation3 + $0x18] sm:$0xff] }
 0x2cc   : > { %2693 = vmatprep.mubr.bf16.mxu1 %v1072_v34  ;;  %2838 = vpow2.f32 %v702_v32  ;;  %v708_v40 = vmul.f32 1.442695, %v3900_v6 }
 0x2cd   : > { %v2829_v53 = vpop.eup %2828  ;;  %2840 = vpow2.f32 %v704_v8 }
 0x2ce   : > { %912 = vadd.xlane.f32.xlu0 %v2829_v53  ;;  %914 = vadd.xlane.f32.xlu1 %v2827_v48  ;;  %v1073_v1 = vpack.c.bf16 %v2827_v48, %v2829_v53  ;;  %v2831_v25 = vpop.eup %2830  ;;  %2842 = vpow2.f32 %v700_v26  ;;  %v861_v53 = vld [vmem:[#allocation3 + $0x8] sm:$0xff]  ;;  %v864_v26 = vld [vmem:[#allocation3 + $0x20] sm:$0xff] }
 0x2cf   : > { %2844 = vpow2.f32 %v708_v40 }
 0x2d0   : > { %2694 = vmatmul.mubr.bf16.gmra.mrb[8].mxu1 %v1073_v1  ;;  %2846 = vpow2.f32 %v706_v63 }
 0x2d1   : > { %v2833_v4 = vpop.eup %2832  ;;  %2848 = vpow2.f32 %v712_v58 }
 0x2d2   : > { %908 = vadd.xlane.f32.xlu0 %v2825_v23  ;;  %910 = vadd.xlane.f32.xlu1 %v2823_v21  ;;  %v1074_v51 = vpack.c.bf16 %v2831_v25, %v2833_v4  ;;  %v2835_v43 = vpop.eup %2834  ;;  %2850 = vpow2.f32 %v710_v60  ;;  %v867_v60 = vld [vmem:[#allocation3 + $0x38] sm:$0xff] }
 0x2d3   : > { %2852 = vpow2.f32 %v716_v61 }
 0x2d4   : > { %2697 = vmatprep.mubr.bf16.mxu1 %v1074_v51  ;;  %2854 = vpow2.f32 %v714_v7 }
 0x2d5   : > { %v2837_v19 = vpop.eup %2836  ;;  %2856 = vpow2.f32 %v720_v18 }
 0x2d6   : > { %916 = vadd.xlane.f32.xlu0 %v2833_v4  ;;  %918 = vadd.xlane.f32.xlu1 %v2831_v25  ;;  %v1075_v57 = vpack.c.bf16 %v2835_v43, %v2837_v19  ;;  %v3671_v62 = vpop.eup %2838  ;;  %2858 = vpow2.f32 %v718_v27 }
 0x2d7   : > { %v2841_v9 = vpop.eup %2840  ;;  %2860 = vpow2.f32 %v724_v14  ;;  %v877_v4 = vmul.f32 %v3671_v62, %v861_v53 }
 0x2d8   : > { %2698 = vmatmul.mubr.bf16.gmra.mrb[12].mxu1 %v1075_v57  ;;  %v2843_v12 = vpop.eup %2842  ;;  %2862 = vpow2.f32 %v722_v59  ;;  %v878_v54 = vmul.f32 %v2841_v9, %v862_v52 }
 0x2d9   : > { %v3686_v28 = vpop.eup %2844  ;;  %2864 = vpow2.f32 %v728_v0  ;;  %v876_v30 = vmul.f32 %v2843_v12, %v860_v46 }
 0x2da   : > { %920 = vadd.xlane.f32.xlu0 %v2837_v19  ;;  %922 = vadd.xlane.f32.xlu1 %v2835_v43  ;;  %v2847_v41 = vpop.eup %2846  ;;  %2866 = vpow2.f32 %v726_v24  ;;  %v866_v19 = vld [vmem:[#allocation3 + $0x30] sm:$0xff]  ;;  %v880_v31 = vmul.f32 %v3686_v28, %v864_v26 }
 0x2db   : > { %v2849_v36 = vpop.eup %2848  ;;  %2868 = vpow2.f32 %v730_v37  ;;  %v879_v48 = vmul.f32 %v2847_v41, %v863_v49 }
 0x2dc   : > { %v3695_v39 = vpop.eup %2850  ;;  %v882_v8 = vmul.f32 %v2849_v36, %v866_v19 }
 0x2dd   : > { %v3704_v33 = vpop.eup %2852  ;;  %v881_v14 = vmul.f32 %v3695_v39, %v865_v15 }
 0x2de   : > { %v3706_v35 = vpop.eup %2854 }
 0x2df   : > { %v3713_v16 = vpop.eup %2856  ;;  %v883_v7 = vmul.f32 %v3706_v35, %v867_v60 }
 0x2e0   : > { %v3715_v17 = vpop.eup %2858  ;;  %v886_v52 = vmul.f32 %v3713_v16, %v870_v50 }
 0x2e1   : > { %v3719_v38 = vpop.eup %2860 }
 0x2e2   : > { %v3721_v20 = vpop.eup %2862 }
 0x2e3   : > { %v3725_v11 = vpop.eup %2864 }
 0x2e4   : > { %v3727_v29 = vpop.eup %2866 }
 0x2e5   : > { %v3731_v47 = vpop.eup %2868 }
 0x2eb   : > { %979 = vperm.xlu1 %2781, %v3671_v62  }
 0x2ef   : > { %984 = vperm.xlu1 %2781, %v2841_v9  }
 0x2f0   : > { %974 = vperm.xlu0 %2780, %v2843_v12  }
 0x2f3   : > { %994 = vperm.xlu1 %2781, %v3686_v28  }
 0x2f4   : > { %989 = vperm.xlu0 %2780, %v2847_v41  }
 0x2f7   : > { %1004 = vperm.xlu1 %2781, %v2849_v36   ;;  %v871_v36 = vld [vmem:[#allocation3 + $0x58] sm:$0xff] }
 0x2f8   : > { %999 = vperm.xlu0 %2780, %v3695_v39   ;;  %v887_v37 = vmul.f32 %v3721_v20, %v871_v36 }
 0x2fb   : > { %1014 = vperm.xlu1 %2781, %v3704_v33  }
 0x2fc   : > { %1009 = vperm.xlu0 %2780, %v3706_v35  }
 0x2ff   : > { %1024 = vperm.xlu1 %2781, %v3713_v16  }
 0x300   : > { %1019 = vperm.xlu0 %2780, %v3715_v17  }
 0x303   : > { %1034 = vperm.xlu1 %2781, %v3719_v38  }
 0x304   : > { %1029 = vperm.xlu0 %2780, %v3721_v20  }
 0x307   : > { %1044 = vperm.xlu1 %2781, %v3725_v11  }
 0x308   : > { %1039 = vperm.xlu0 %2780, %v3727_v29  }
 0x30c   : > { %1049 = vperm.xlu0 %2780, %v3731_v47  }
 0x33a   : > { %v897_v42 = vpop.xlane.xlu0 %896 }
 0x33b   : > { %v926_v21 = vadd.f32 %v897_v42, %v878_v54  ;;  %v893_v23 = vpop.xlane.xlu1 %892  ;;  %v869_v42 = vld [vmem:[#allocation3 + $0x48] sm:$0xff] }
 0x33c   : > { %v924_v34 = vadd.f32 %v893_v23, %v876_v30  ;;  %v868_v30 = vld [vmem:[#allocation3 + $0x40] sm:$0xff]  ;;  %v885_v20 = vmul.f32 %v3715_v17, %v869_v42 }
 0x33d   : > { %942 = vst.msk [vmem:[#allocation3 + $0x10] sm:$0xff] %vm308_vm0, %v926_v21  ;;  %v884_v16 = vmul.f32 %v3704_v33, %v868_v30 }
 0x33e   : > { %940 = vst.msk [vmem:[#allocation3] sm:$0xff] %vm308_vm0, %v924_v34 }
 0x33f   : > { %v899_v1 = vpop.xlane.xlu1 %898 }
 0x340   : > { %v927_v25 = vadd.f32 %v899_v1, %v879_v48 }
 0x342   : > { %943 = vst.msk [vmem:[#allocation3 + $0x18] sm:$0xff] %vm308_vm0, %v927_v25  ;;  %v895_v51 = vpop.xlane.xlu0 %894 }
 0x343   : > { %v925_v43 = vadd.f32 %v895_v51, %v877_v4  ;;  %v873_v4 = vld [vmem:[#allocation3 + $0x68] sm:$0xff]  ;;  %v872_v51 = vld [vmem:[#allocation3 + $0x60] sm:$0xff] }
 0x344   : > { %v2169_v57 = vld [vmem:[#allocation3 + $0x10] sm:$0xff]  ;;  %v889_v17 = vmul.f32 %v3727_v29, %v873_v4  ;;  %v888_v33 = vmul.f32 %v3719_v38, %v872_v51 }
 0x345   : > { %941 = vst.msk [vmem:[#allocation3 + $0x8] sm:$0xff] %vm308_vm0, %v925_v43  ;;  %2870 = vrcp.f32 %v2169_v57  ;;  %v2167_v32 = vld [vmem:[#allocation3] sm:$0xff] }
 0x346   : > { %2872 = vrcp.f32 %v2167_v32 }
 0x347   : > { %v905_v13 = vpop.xlane.xlu0 %904 }
 0x348   : > { %v930_v6 = vadd.f32 %v905_v13, %v882_v8 }
 0x349   : > { %v2170_v40 = vld [vmem:[#allocation3 + $0x18] sm:$0xff] }
 0x34a   : > { %946 = vst.msk [vmem:[#allocation3 + $0x30] sm:$0xff] %vm308_vm0, %v930_v6  ;;  %2874 = vrcp.f32 %v2170_v40 }
 0x34b   : > { %v901_v63 = vpop.xlane.xlu0 %900 }
 0x34c   : > { %v928_v55 = vadd.f32 %v901_v63, %v880_v31  ;;  %v2168_v58 = vld [vmem:[#allocation3 + $0x8] sm:$0xff]  ;;  %v875_v31 = vld [vmem:[#allocation3 + $0x78] sm:$0xff]  ;;  %v874_v63 = vld [vmem:[#allocation3 + $0x70] sm:$0xff] }
 0x34d   : > { %2876 = vrcp.f32 %v2168_v58  ;;  %v891_v29 = vmul.f32 %v3731_v47, %v875_v31  ;;  %v890_v38 = vmul.f32 %v3725_v11, %v874_v63 }
 0x34e   : > { %944 = vst.msk [vmem:[#allocation3 + $0x20] sm:$0xff] %vm308_vm0, %v928_v55 }
 0x34f   : > { %v2871_v56 = vpop.eup %2870 }
 0x350   : > { %v2873_v62 = vpop.eup %2872  ;;  %v2201_v5 = vmul.f32 %v2871_v56, %v2169_v57 }
 0x351   : > { %v2199_v61 = vmul.f32 %v2873_v62, %v2167_v32  ;;  %v2173_v3 = vld [vmem:[#allocation3 + $0x30] sm:$0xff] }
 0x352   : > { %v2217_v9 = vsub.f32 2.0, %v2201_v5  ;;  %2878 = vrcp.f32 %v2173_v3 }
 0x353   : > { %v907_v12 = vpop.xlane.xlu1 %906  ;;  %v2215_v28 = vsub.f32 2.0, %v2199_v61 }
 0x354   : > { %v2875_v18 = vpop.eup %2874  ;;  %v931_v22 = vadd.f32 %v907_v12, %v883_v7  ;;  %v2233_v27 = vmul.f32 %v2871_v56, %v2217_v9 }
 0x355   : > { %v2202_v41 = vmul.f32 %v2875_v18, %v2170_v40  ;;  %v2171_v10 = vld [vmem:[#allocation3 + $0x20] sm:$0xff]  ;;  %v2231_v24 = vmul.f32 %v2873_v62, %v2215_v28 }
 0x356   : > { %947 = vst.msk [vmem:[#allocation3 + $0x38] sm:$0xff] %vm308_vm0, %v931_v22  ;;  %2275 = vperm.xlu1 %2781, %v2233_v27   ;;  %2880 = vrcp.f32 %v2171_v10 }
 0x357   : > { %v2877_v45 = vpop.eup %2876  ;;  %v903_v59 = vpop.xlane.xlu1 %902  ;;  %v2218_v0 = vsub.f32 2.0, %v2202_v41 }
 0x358   : > { %v929_v2 = vadd.f32 %v903_v59, %v881_v14  ;;  %v2200_v35 = vmul.f32 %v2877_v45, %v2168_v58 }
 0x359   : > { %v2234_v44 = vmul.f32 %v2875_v18, %v2218_v0 }
 0x35a   : > { %945 = vst.msk [vmem:[#allocation3 + $0x28] sm:$0xff] %vm308_vm0, %v929_v2  ;;  %2265 = vperm.xlu1 %2781, %v2231_v24   ;;  %v2216_v46 = vsub.f32 2.0, %v2200_v35 }
 0x35b   : > { %v915_v54 = vpop.xlane.xlu1 %914  ;;  %v913_v39 = vpop.xlane.xlu0 %912  ;;  %2280 = vperm.xlu0 %2780, %v2234_v44  }
 0x35c   : > { %v2879_v21 = vpop.eup %2878  ;;  %v935_v23 = vadd.f32 %v915_v54, %v887_v37  ;;  %v934_v49 = vadd.f32 %v913_v39, %v886_v52  ;;  %v2232_v34 = vmul.f32 %v2877_v45, %v2216_v46 }
 0x35d   : > { %v2205_v48 = vmul.f32 %v2879_v21, %v2173_v3  ;;  %v2174_v53 = vld [vmem:[#allocation3 + $0x38] sm:$0xff] }
 0x35e   : > { %951 = vst.msk [vmem:[#allocation3 + $0x58] sm:$0xff] %vm308_vm0, %v935_v23  ;;  %950 = vst.msk [vmem:[#allocation3 + $0x50] sm:$0xff] %vm308_vm0, %v934_v49  ;;  %2882 = vrcp.f32 %v2174_v53 }
 0x35f   : > { %v911_v1 = vpop.xlane.xlu1 %910  ;;  %v909_v25 = vpop.xlane.xlu0 %908  ;;  %2270 = vperm.xlu0 %2780, %v2232_v34   ;;  %v2221_v43 = vsub.f32 2.0, %v2205_v48 }
 0x360   : > { %v2881_v19 = vpop.eup %2880  ;;  %v933_v57 = vadd.f32 %v911_v1, %v885_v20  ;;  %v932_v32 = vadd.f32 %v909_v25, %v884_v16 }
 0x361   : > { %v2237_v8 = vmul.f32 %v2879_v21, %v2221_v43  ;;  %v2203_v13 = vmul.f32 %v2881_v19, %v2171_v10  ;;  %v2172_v26 = vld [vmem:[#allocation3 + $0x28] sm:$0xff] }
 0x362   : > { %949 = vst.msk [vmem:[#allocation3 + $0x48] sm:$0xff] %vm308_vm0, %v933_v57  ;;  %948 = vst.msk [vmem:[#allocation3 + $0x40] sm:$0xff] %vm308_vm0, %v932_v32  ;;  %2884 = vrcp.f32 %v2172_v26 }
 0x363   : > { %v919_v6 = vpop.xlane.xlu1 %918  ;;  %v917_v40 = vpop.xlane.xlu0 %916  ;;  %2295 = vperm.xlu1 %2781, %v2237_v8   ;;  %v2219_v55 = vsub.f32 2.0, %v2203_v13 }
 0x364   : > { %v937_v58 = vadd.f32 %v919_v6, %v889_v17  ;;  %v936_v56 = vadd.f32 %v917_v40, %v888_v33 }
 0x365   : > { %v2235_v60 = vmul.f32 %v2881_v19, %v2219_v55  ;;  %v2178_v62 = vld [vmem:[#allocation3 + $0x58] sm:$0xff]  ;;  %v2177_v5 = vld [vmem:[#allocation3 + $0x50] sm:$0xff] }
 0x366   : > { %953 = vst.msk [vmem:[#allocation3 + $0x68] sm:$0xff] %vm308_vm0, %v937_v58  ;;  %952 = vst.msk [vmem:[#allocation3 + $0x60] sm:$0xff] %vm308_vm0, %v936_v56  ;;  %2886 = vrcp.f32 %v2178_v62 }
 0x367   : > { %v923_v61 = vpop.xlane.xlu1 %922  ;;  %v921_v3 = vpop.xlane.xlu0 %920  ;;  %2285 = vperm.xlu1 %2781, %v2235_v60   ;;  %2888 = vrcp.f32 %v2177_v5 }
 0x368   : > { %v2883_v7 = vpop.eup %2882  ;;  %v939_v9 = vadd.f32 %v923_v61, %v891_v29  ;;  %v938_v12 = vadd.f32 %v921_v3, %v890_v38 }
 0x369   : > { %v2206_v15 = vmul.f32 %v2883_v7, %v2174_v53  ;;  %v2176_v18 = vld [vmem:[#allocation3 + $0x48] sm:$0xff]  ;;  %v2175_v22 = vld [vmem:[#allocation3 + $0x40] sm:$0xff] }
 0x36a   : > { %955 = vst.msk [vmem:[#allocation3 + $0x78] sm:$0xff] %vm308_vm0, %v939_v9  ;;  %954 = vst.msk [vmem:[#allocation3 + $0x70] sm:$0xff] %vm308_vm0, %v938_v12  ;;  %2890 = vrcp.f32 %v2176_v18 }
 0x36b   : > { %v2222_v27 = vsub.f32 2.0, %v2206_v15  ;;  %2892 = vrcp.f32 %v2175_v22  ;;  %v980_v29 = vpop.permute.xlu1 %979 }
 0x36c   : > { %v2885_v47 = vpop.eup %2884 }
 0x36d   : > { %v2238_v11 = vmul.f32 %v2883_v7, %v2222_v27  ;;  %v2204_v28 = vmul.f32 %v2885_v47, %v2172_v26  ;;  %v2180_v41 = vld [vmem:[#allocation3 + $0x68] sm:$0xff]  ;;  %v2179_v10 = vld [vmem:[#allocation3 + $0x60] sm:$0xff] }
 0x36e   : > { %2894 = vrcp.f32 %v2180_v41 }
 0x36f   : > { %2300 = vperm.xlu0 %2780, %v2238_v11   ;;  %v2220_v14 = vsub.f32 2.0, %v2204_v28  ;;  %2896 = vrcp.f32 %v2179_v10  ;;  %v975_v61 = vpop.permute.xlu0 %974  ;;  %v985_v7 = vpop.permute.xlu1 %984 }
 0x370   : > { %v2887_v45 = vpop.eup %2886 }
 0x371   : > { %v2889_v59 = vpop.eup %2888  ;;  %v2236_v36 = vmul.f32 %v2885_v47, %v2220_v14  ;;  %v2210_v50 = vmul.f32 %v2887_v45, %v2178_v62  ;;  %v2182_v0 = vld [vmem:[#allocation3 + $0x78] sm:$0xff]  ;;  %v2181_v2 = vld [vmem:[#allocation3 + $0x70] sm:$0xff] }
 0x372   : > { %v2209_v24 = vmul.f32 %v2889_v59, %v2177_v5  ;;  %2898 = vrcp.f32 %v2182_v0 }
 0x373   : > { %2290 = vperm.xlu0 %2780, %v2236_v36   ;;  %v2226_v35 = vsub.f32 2.0, %v2210_v50  ;;  %2900 = vrcp.f32 %v2181_v2  ;;  %v990_v15 = vpop.permute.xlu0 %989  ;;  %v1054_v36 = vmul.f32 0.0, %v985_v7 }
 0x374   : > { %v2891_v44 = vpop.eup %2890  ;;  %v2225_v37 = vsub.f32 2.0, %v2209_v24 }
 0x375   : > { %v2893_v52 = vpop.eup %2892  ;;  %v2242_v46 = vmul.f32 %v2887_v45, %v2226_v35  ;;  %v2208_v54 = vmul.f32 %v2891_v44, %v2176_v18  ;;  %v995_v18 = vpop.permute.xlu1 %994 }
 0x376   : > { %v2241_v39 = vmul.f32 %v2889_v59, %v2225_v37  ;;  %v2207_v42 = vmul.f32 %v2893_v52, %v2175_v22 }
 0x377   : > { %2320 = vperm.xlu0 %2780, %v2242_v46   ;;  %v2224_v30 = vsub.f32 2.0, %v2208_v54  ;;  %v1000_v22 = vpop.permute.xlu0 %999 }
 0x378   : > { %v2895_v21 = vpop.eup %2894  ;;  %2315 = vperm.xlu1 %2781, %v2241_v39   ;;  %v2223_v23 = vsub.f32 2.0, %v2207_v42  ;;  %v1053_v42 = vmul.f32 0.0, %v980_v29 }
 0x379   : > { %v2897_v49 = vpop.eup %2896  ;;  %v2240_v34 = vmul.f32 %v2891_v44, %v2224_v30  ;;  %v2212_v48 = vmul.f32 %v2895_v21, %v2180_v41  ;;  %v1005_v27 = vpop.permute.xlu1 %1004  ;;  %v1055_v44 = vmul.f32 0.0, %v990_v15 }
 0x37a   : > { %v2239_v53 = vmul.f32 %v2893_v52, %v2223_v23  ;;  %v2211_v20 = vmul.f32 %v2897_v49, %v2179_v10 }
 0x37b   : > { %2310 = vperm.xlu0 %2780, %v2240_v34   ;;  %v2228_v16 = vsub.f32 2.0, %v2212_v48  ;;  %v1010_v47 = vpop.permute.xlu0 %1009 }
 0x37c   : > { %v2899_v1 = vpop.eup %2898  ;;  %2305 = vperm.xlu1 %2781, %v2239_v53   ;;  %v2227_v25 = vsub.f32 2.0, %v2211_v20  ;;  %v1056_v20 = vmul.f32 0.0, %v995_v18 }
 0x37d   : > { %v2901_v4 = vpop.eup %2900  ;;  %v2244_v51 = vmul.f32 %v2895_v21, %v2228_v16  ;;  %v2214_v43 = vmul.f32 %v2899_v1, %v2182_v0  ;;  %v1015_v11 = vpop.permute.xlu1 %1014 }
 0x37e   : > { %v2243_v19 = vmul.f32 %v2897_v49, %v2227_v25  ;;  %v2213_v57 = vmul.f32 %v2901_v4, %v2181_v2  ;;  %v1052_v2 = vmul.f32 0.0, %v975_v61  ;;  %v1058_v49 = vmul.f32 0.0, %v1005_v27 }
 0x37f   : > { %2330 = vperm.xlu0 %2780, %v2244_v51   ;;  %v2230_v32 = vsub.f32 2.0, %v2214_v43  ;;  %v1020_v28 = vpop.permute.xlu0 %1019  ;;  %v1059_v51 = vmul.f32 0.0, %v1010_v47  ;;  %v1060_v61 = vmul.f32 0.0, %v1015_v11 }
 0x380   : > { %2325 = vperm.xlu1 %2781, %v2243_v19   ;;  %v2229_v8 = vsub.f32 2.0, %v2213_v57  ;;  %v1057_v57 = vmul.f32 0.0, %v1000_v22 }
 0x381   : > { %v2246_v13 = vmul.f32 %v2899_v1, %v2230_v32  ;;  %v1025_v41 = vpop.permute.xlu1 %1024 }
 0x382   : > { %v2245_v26 = vmul.f32 %v2901_v4, %v2229_v8 }
 0x383   : > { %2340 = vperm.xlu0 %2780, %v2246_v13   ;;  %v1030_v10 = vpop.permute.xlu0 %1029 }
 0x384   : > { %2335 = vperm.xlu1 %2781, %v2245_v26   ;;  %v1063_v26 = vmul.f32 0.0, %v1030_v10 }
 0x385   : > { %v3778_v14 = vpop.permute.xlu1 %1034 }
 0x386   : > { %v1064_v27 = vmul.f32 0.0, %v3778_v14 }
 0x387   : > { %v1040_v45 = vpop.permute.xlu0 %1039 }
 0x389   : > { %v3780_v59 = vpop.permute.xlu1 %1044 }
 0x38b   : > { %v2687_v17 = vpop.f32.mrb[0].mxu1  ;;  %v1050_v24 = vpop.permute.xlu0 %1049 }
 0x38c   : > { %v1158_v33 = vpop.f32.mrb[1].mxu1  ;;  %v1223_v50 = vadd.f32 %v2687_v17, %v1054_v36 }
 0x38d   : > { %v2688_v6 = vpop.f32.mrb[2].mxu1  ;;  %v1221_v37 = vadd.f32 %v1158_v33, %v1052_v2  ;;  %v1062_v33 = vmul.f32 0.0, %v1025_v41 }
 0x38e   : > { %v1161_v40 = vpop.f32.mrb[3].mxu1  ;;  %v1224_v52 = vadd.f32 %v2688_v6, %v1055_v44 }
 0x38f   : > { %v1222_v21 = vadd.f32 %v1161_v40, %v1053_v42 }
 0x39b   : > { %v2691_v31 = vpop.f32.mrb[4].mxu1 }
 0x39c   : > { %v1174_v63 = vpop.f32.mrb[5].mxu1  ;;  %v1227_v48 = vadd.f32 %v2691_v31, %v1058_v49 }
 0x39d   : > { %v2692_v55 = vpop.f32.mrb[6].mxu1  ;;  %v1225_v1 = vadd.f32 %v1174_v63, %v1056_v20  ;;  %v1061_v63 = vmul.f32 0.0, %v1020_v28 }
 0x39e   : > { %v1177_v58 = vpop.f32.mrb[7].mxu1  ;;  %v1228_v43 = vadd.f32 %v2692_v55, %v1059_v51 }
 0x39f   : > { %v1226_v8 = vadd.f32 %v1177_v58, %v1057_v57 }
 0x3a3   : > { %v3762_v56 = vpop.f32.mrb[8].mxu1 }
 0x3a4   : > { %v3764_v60 = vpop.f32.mrb[9].mxu1  ;;  %v1231_v40 = vadd.f32 %v3762_v56, %v1062_v33 }
 0x3a5   : > { %v3766_v62 = vpop.f32.mrb[10].mxu1  ;;  %v1229_v15 = vadd.f32 %v3764_v60, %v1060_v61  ;;  %v1067_v60 = vmul.f32 0.0, %v1050_v24 }
 0x3a6   : > { %v3768_v5 = vpop.f32.mrb[11].mxu1  ;;  %v1232_v6 = vadd.f32 %v3766_v62, %v1063_v26  ;;  %v1065_v62 = vmul.f32 0.0, %v1040_v45  ;;  %v1066_v45 = vmul.f32 0.0, %v3780_v59 }
 0x3a7   : > { %v1230_v7 = vadd.f32 %v3768_v5, %v1061_v63 }
 0x3ab   : > { %v3770_v38 = vpop.f32.mrb[12].mxu1 }
 0x3ac   : > { %v3772_v3 = vpop.f32.mrb[13].mxu1 }
 0x3ad   : > { %v3774_v9 = vpop.f32.mrb[14].mxu1  ;;  %v1233_v5 = vadd.f32 %v3772_v3, %v1064_v27 }
 0x3ae   : > { %v3776_v12 = vpop.f32.mrb[15].mxu1  ;;  %v1236_v14 = vadd.f32 %v3774_v9, %v1067_v60 }
 0x3af   : > { %v1234_v11 = vadd.f32 %v3776_v12, %v1065_v62  ;;  %v1235_v12 = vadd.f32 %v3770_v38, %v1066_v45 }
 0x3d5   : > { %v2276_v0 = vpop.permute.xlu1 %2275 }
 0x3d6   : > { %v2345_v35 = vmul.f32 %v2276_v0, %v1223_v50 }
 0x3d8   : > { %2361 = vst [vmem:[%s3783_s16 + $0x10] sm:$0xff] %v2345_v35 }
 0x3d9   : > { %v2266_v46 = vpop.permute.xlu1 %2265 }
 0x3da   : > { %v2343_v54 = vmul.f32 %v2266_v46, %v1221_v37  ;;  %v2281_v39 = vpop.permute.xlu0 %2280 }
 0x3db   : > { %v2346_v30 = vmul.f32 %v2281_v39, %v1224_v52 }
 0x3dc   : > { %2359 = vst [vmem:[%s3783_s16] sm:$0xff] %v2343_v54 }
 0x3dd   : > { %2362 = vst [vmem:[%s3783_s16 + $0x18] sm:$0xff] %v2346_v30 }
 0x3de   : > { %v2271_v23 = vpop.permute.xlu0 %2270 }
 0x3df   : > { %v2344_v34 = vmul.f32 %v2271_v23, %v1222_v21 }
 0x3e1   : > { %2360 = vst [vmem:[%s3783_s16 + $0x8] sm:$0xff] %v2344_v34 }
 0x3e2   : > { %v2296_v53 = vpop.permute.xlu1 %2295 }
 0x3e3   : > { %v2349_v16 = vmul.f32 %v2296_v53, %v1227_v48 }
 0x3e5   : > { %2365 = vst [vmem:[%s3783_s16 + $0x30] sm:$0xff] %v2349_v16 }
 0x3e6   : > { %v2286_v25 = vpop.permute.xlu1 %2285 }
 0x3e7   : > { %v2347_v4 = vmul.f32 %v2286_v25, %v1225_v1 }
 0x3e9   : > { %2363 = vst [vmem:[%s3783_s16 + $0x20] sm:$0xff] %v2347_v4 }
 0x3ee   : > { %v2301_v19 = vpop.permute.xlu0 %2300 }
 0x3ef   : > { %v2350_v32 = vmul.f32 %v2301_v19, %v1228_v43 }
 0x3f1   : > { %2366 = vst [vmem:[%s3783_s16 + $0x38] sm:$0xff] %v2350_v32 }
 0x3f2   : > { %v2291_v13 = vpop.permute.xlu0 %2290 }
 0x3f3   : > { %v2348_v17 = vmul.f32 %v2291_v13, %v1226_v8 }
 0x3f5   : > { %2364 = vst [vmem:[%s3783_s16 + $0x28] sm:$0xff] %v2348_v17 }
 0x3f6   : > { %v2321_v31 = vpop.permute.xlu0 %2320 }
 0x3f7   : > { %v2354_v55 = vmul.f32 %v2321_v31, %v1232_v6  ;;  %v2316_v29 = vpop.permute.xlu1 %2315 }
 0x3f8   : > { %v2353_v58 = vmul.f32 %v2316_v29, %v1231_v40 }
 0x3f9   : > { %2370 = vst [vmem:[%s3783_s16 + $0x58] sm:$0xff] %v2354_v55 }
 0x3fa   : > { %2369 = vst [vmem:[%s3783_s16 + $0x50] sm:$0xff] %v2353_v58  ;;  %v2311_v18 = vpop.permute.xlu0 %2310 }
 0x3fb   : > { %v2352_v22 = vmul.f32 %v2311_v18, %v1230_v7  ;;  %v2306_v56 = vpop.permute.xlu1 %2305 }
 0x3fc   : > { %v2351_v47 = vmul.f32 %v2306_v56, %v1229_v15 }
 0x3fd   : > { %2368 = vst [vmem:[%s3783_s16 + $0x48] sm:$0xff] %v2352_v22 }
 0x3fe   : > { %2367 = vst [vmem:[%s3783_s16 + $0x40] sm:$0xff] %v2351_v47  ;;  %v2331_v28 = vpop.permute.xlu0 %2330 }
 0x3ff   : > { %v2356_v41 = vmul.f32 %v2331_v28, %v1234_v11  ;;  %v2326_v10 = vpop.permute.xlu1 %2325 }
 0x400   : > { %v2355_v36 = vmul.f32 %v2326_v10, %v1233_v5 }
 0x401   : > { %2372 = vst [vmem:[%s3783_s16 + $0x68] sm:$0xff] %v2356_v41 }
 0x402   : > { %2371 = vst [vmem:[%s3783_s16 + $0x60] sm:$0xff] %v2355_v36  ;;  %v2341_v3 = vpop.permute.xlu0 %2340 }
 0x403   : > { %v2358_v50 = vmul.f32 %v2341_v3, %v1236_v14  ;;  %v2336_v0 = vpop.permute.xlu1 %2335 }
 0x404   : > { %v2357_v59 = vmul.f32 %v2336_v0, %v1235_v12 }
 0x405   : > { %2374 = vst [vmem:[%s3783_s16 + $0x78] sm:$0xff] %v2358_v50 }
 0x406   : > { %2373 = vst [vmem:[%s3783_s16 + $0x70] sm:$0xff] %v2357_v59 }
 0x407   : > { %3005 = shalt.err (!%p3002_p13)
}
 0x408   : > { %s3006_s29 = scalar_lea.hbm %s3814_s6, 2048  ;;  %s3010_s4 = scalar_lea.hbm %s3870_s3, 4096 }
 0x409   : > { %p3007_p11 = scmp.ne.s32.totalorder %s3814_s6, %s3006_s29  ;;  %p3011_p7 = scmp.lt.u32.totalorder %s3814_s6, %s3870_s3 }
 0x40a   : > { %p3012_p4 = scmp.lt.u32.totalorder %s3010_s4, %s3006_s29  ;;  %p3014_p0 = scmp.lt.u32.totalorder %s3006_s29, %s3814_s6 }
 0x40b   : > { %p3008_p2 = pnand %p3007_p11, %p3913_p10 }
 0x40c   : > { %p3013_p3 = por %p3012_p4, %p3011_p7 }
 0x40d   : > { %p3009_p5 = pneg %p3008_p2 }
 0x40e   : > { %p3015_p8 = por %p3014_p0, %p3013_p3 }
 0x410   : > { %p3016_p9 = pnand %p3015_p8, %p3009_p5 }
 0x412   : > { %3019 = shalt.err (!%p3016_p9)
}
 0x413   : > { %s3089_s19 = smov 128   ;;  %s3090_s9 = smov 8  }
 0x414   : > { %2707 = dma.vmem_to_hbm [thread:$0]  (%p3913_p10), %s3816_s5, 2048, %s3814_s6, %s2376_s15, %s3089_s19, %s3089_s19, %s3090_s9  }
 0x415 PF: > { %s2406_s18 = sand.u32 1, %s3058_s12   ;;  %p3914_p12 = scmp.ne.s32.totalorder %s3887_s27, 0 }
 0x416   : > { %p3915_p1 = scmp.ge.s32.totalorder %s3078_s17, 2  ;;  %s2407_s24 = scalar_lea.sflag [#allocation7], %s2406_s18 }
 0x418   : > { %p2720_p6 = pnand %p3915_p1, %p3914_p12 }
 0x41a   : > { %3053 = dma.done.wait (!%p2720_p6), %s2407_s24, 2048  }
 0x41b   : > { %3055 = vsyncadd (!%p2720_p6), %s2407_s24, 4294965248  ;;  %s22_s17 = sadd.s32 1, %s3078_s17   ;;  %s3916_s16 = sld [smem:[#allocation17_spill]] }
 0x41c   : > { %p19_p13 = scmp.ge.s32.totalorder %s22_s17, 4   ;;  %s3917_s15 = sld [smem:[#allocation15_spill]] }
 0x41d   : > { %s3918_s25 = sld [smem:[#allocation16_spill]]  ;;  %s3919_s12 = smov %s3062_s13 }
 0x41e   : > { %s3920_s13 = smov %s3066_s14  ;;  %21 = sbr.rel (!%p19_p13) target bundleno = 10 (0xa), region = 113 }
 0x421   : > { %s3921_s14 = smov %s3916_s16 }
 0x423   : > { %s3922_s16 = smov %s3918_s25 }
 0x425   :  { %2412 = vsyncpa [#allocation6], 1 }
 0x426   :  { %2414 = vsyncpa [#allocation6 + $0x1], 1 }
 0x427   :  { %2415 = vsyncpa [#allocation9], 1 }
 0x428   :  { %2417 = vsyncpa [#allocation9 + $0x1], 1 }
 0x429   :  { %2418 = vsyncpa [#allocation7], 1 }
 0x42a   :  { %2420 = vsyncpa [#allocation7 + $0x1], 1 }

</bundles_post_ra>
